<compile_context>
chip_gen: v6e
topology: v6e:2x2x1
jax: 0.10.0
libtpu: 0.0.40
codegen_flags: <defaults>
</compile_context>

<pallas_src>
import math
import functools
import jax
import jax.numpy as jnp
import numpy as np
from jax.experimental import pallas as pl
from jax.experimental.pallas import tpu as pltpu


def _largest_divisor_at_most(n, cap):
    for d in range(min(n, cap), 0, -1):
        if n % d == 0:
            return d
    return 1


# ----------------------------------------------------------------------------
# Fused 2-layer LSTM kernel.
# PyTorch gate order: i, f, g, o ;  gates = x @ W_ih^T + h @ W_hh^T + (b_ih + b_hh)
# ----------------------------------------------------------------------------
def _lstm2_kernel(x_ref, h0_ref, c0_ref,
                  wih0_hbm, whh0_hbm, b0_ref, wih1_hbm, whh1_hbm, b1_ref,
                  y_ref, hn_ref, cn_ref,
                  wih0_v, whh0_v, wih1_v, whh1_v, h_sc, c_sc, h0blk_sc, dma_sem,
                  *, t_blk):
    tb = pl.program_id(0)

    @pl.when(tb == 0)
    def _init():
        # One-time copy of the (grid-invariant) weights into VMEM scratch.
        cps = [pltpu.make_async_copy(wih0_hbm, wih0_v, dma_sem.at[0]),
               pltpu.make_async_copy(whh0_hbm, whh0_v, dma_sem.at[1]),
               pltpu.make_async_copy(wih1_hbm, wih1_v, dma_sem.at[2]),
               pltpu.make_async_copy(whh1_hbm, whh1_v, dma_sem.at[3])]
        for cp in cps:
            cp.start()
        for cp in cps:
            cp.wait()
        h_sc[...] = h0_ref[...]
        c_sc[...] = c0_ref[...]

    wih0 = wih0_v[...]            # (I, 4H) bf16, resident across the whole grid
    whh0 = whh0_v[...]            # (H, 4H) bf16
    wih1 = wih1_v[...]            # (H, 4H) bf16
    whh1 = whh1_v[...]            # (H, 4H) bf16
    b0 = b0_ref[...]              # (1, 4H) f32
    b1 = b1_ref[...]              # (1, 4H) f32

    H = whh0.shape[0]
    B = h0_ref.shape[1]

    def gate_update(gates, c):
        i_g = jax.nn.sigmoid(gates[:, 0 * H:1 * H])
        f_g = jax.nn.sigmoid(gates[:, 1 * H:2 * H])
        g_g = jnp.tanh(gates[:, 2 * H:3 * H])
        o_g = jax.nn.sigmoid(gates[:, 3 * H:4 * H])
        c_new = f_g * c + i_g * g_g
        h_new = o_g * jnp.tanh(c_new)
        return h_new, c_new

    # ---- Layer 0 -------------------------------------------------------------
    # Block-level input projection: one big MXU matmul for all t_blk timesteps.
    x_blk = x_ref[...]                                            # (t_blk, B, I) f32
    I = x_blk.shape[-1]
    xg0 = (jnp.dot(x_blk.reshape(t_blk * B, I).astype(jnp.bfloat16), wih0,
                   preferred_element_type=jnp.float32) + b0
           ).reshape(t_blk, B, 4 * H)

    h0, c0 = h_sc[0], c_sc[0]
    for tt in range(t_blk):                       # static trip count -> full unroll
        gates = xg0[tt] + jnp.dot(h0.astype(jnp.bfloat16), whh0,
                                  preferred_element_type=jnp.float32)
        h0, c0 = gate_update(gates, c0)
        h0blk_sc[tt] = h0                         # stage layer-0 output in VMEM

    # ---- Layer 1 -------------------------------------------------------------
    # Layer-1 input projection over the whole block of staged layer-0 outputs.
    xg1 = (jnp.dot(h0blk_sc[...].reshape(t_blk * B, H).astype(jnp.bfloat16), wih1,
                   preferred_element_type=jnp.float32) + b1
           ).reshape(t_blk, B, 4 * H)

    h1, c1 = h_sc[1], c_sc[1]
    for tt in range(t_blk):
        gates = xg1[tt] + jnp.dot(h1.astype(jnp.bfloat16), whh1,
                                  preferred_element_type=jnp.float32)
        h1, c1 = gate_update(gates, c1)
        y_ref[tt] = h1

    # Persist states for the next time block.
    h_sc[0] = h0
    h_sc[1] = h1
    c_sc[0] = c0
    c_sc[1] = c1

    @pl.when(tb == pl.num_programs(0) - 1)
    def _finalize():                              # write final states exactly once
        hn_ref[0] = h0
        hn_ref[1] = h1
        cn_ref[0] = c0
        cn_ref[1] = c1


def lstm2_fused(emb, h0s, c0s, wih0, whh0, b0, wih1, whh1, b1):
    """emb: (S, B, I) f32; h0s/c0s: (2, B, H) f32. Returns unpadded (y, hT, cT)."""
    S, B, I = emb.shape
    H = h0s.shape[-1]

    # Pad batch to a multiple of 8 -> sublane-dense vregs and stores.
    B_pad = -(-B // 8) * 8
    if B_pad != B:
        pad = ((0, 0), (0, B_pad - B), (0, 0))
        emb = jnp.pad(emb, pad)
        h0s = jnp.pad(h0s, pad)
        c0s = jnp.pad(c0s, pad)

    t_blk = _largest_divisor_at_most(S, 8)   # timesteps per grid step (unrolled)
    grid = (S // t_blk,)

    out_shapes = (jax.ShapeDtypeStruct((S, B_pad, H), jnp.float32),
                  jax.ShapeDtypeStruct((2, B_pad, H), jnp.float32),
                  jax.ShapeDtypeStruct((2, B_pad, H), jnp.float32))

    kernel = functools.partial(_lstm2_kernel, t_blk=t_blk)

    y, hT, cT = pl.pallas_call(
        kernel,
        out_shape=out_shapes,
        grid_spec=pltpu.PrefetchScalarGridSpec(
            num_scalar_prefetch=0,
            grid=grid,
            in_specs=[
                pl.BlockSpec((t_blk, B_pad, I), lambda t: (t, 0, 0)),   # x time block
                pl.BlockSpec((2, B_pad, H), lambda t: (0, 0, 0)),       # h0 (both layers)
                pl.BlockSpec((2, B_pad, H), lambda t: (0, 0, 0)),       # c0
                pl.BlockSpec(memory_space=pl.ANY),                      # W_ih^T layer 0 (bf16)
                pl.BlockSpec(memory_space=pl.ANY),                      # W_hh^T layer 0 (bf16)
                pl.BlockSpec((1, 4 * H), lambda t: (0, 0)),             # layer-0 bias
                pl.BlockSpec(memory_space=pl.ANY),                      # W_ih^T layer 1 (bf16)
                pl.BlockSpec(memory_space=pl.ANY),                      # W_hh^T layer 1 (bf16)
                pl.BlockSpec((1, 4 * H), lambda t: (0, 0)),             # layer-1 bias
            ],
            out_specs=[
                pl.BlockSpec((t_blk, B_pad, H), lambda t: (t, 0, 0)),   # layer-1 output
                pl.BlockSpec((2, B_pad, H), lambda t: (0, 0, 0)),       # final h
                pl.BlockSpec((2, B_pad, H), lambda t: (0, 0, 0)),       # final c
            ],
            scratch_shapes=[
                pltpu.VMEM((I, 4 * H), jnp.bfloat16),        # single-buffered weights
                pltpu.VMEM((H, 4 * H), jnp.bfloat16),
                pltpu.VMEM((H, 4 * H), jnp.bfloat16),
                pltpu.VMEM((H, 4 * H), jnp.bfloat16),
                pltpu.VMEM((2, B_pad, H), jnp.float32),      # h state (both layers)
                pltpu.VMEM((2, B_pad, H), jnp.float32),      # c state (both layers)
                pltpu.VMEM((t_blk, B_pad, H), jnp.float32),  # staged layer-0 block output
                pltpu.SemaphoreType.DMA((4,)),
            ],
        ),
        compiler_params=pltpu.CompilerParams(
            dimension_semantics=("arbitrary",)),   # time recurrence is sequential
    )(emb, h0s, c0s, wih0, whh0, b0, wih1, whh1, b1)

    return y[:, :B], hT[:, :B], cT[:, :B]


# ----------------------------------------------------------------------------
# Decoder + log_softmax kernel, row-tiled ("parallel" -> megacore friendly).
# ----------------------------------------------------------------------------
def _decoder_kernel(x_ref, w_t_ref, b_ref, out_ref):
    logits = jnp.dot(x_ref[...].astype(jnp.bfloat16), w_t_ref[...],
                     preferred_element_type=jnp.float32) + b_ref[...]
    m = jnp.max(logits, axis=-1, keepdims=True)
    shifted = logits - m
    lse = jnp.log(jnp.sum(jnp.exp(shifted), axis=-1, keepdims=True))
    out_ref[...] = shifted - lse


def decoder_logsoftmax(x2d, dec_w_t, dec_b_row):
    N, H = x2d.shape
    V = dec_w_t.shape[1]
    tile_n = 128 if N >= 128 else 8
    n_pad = -(-N // tile_n) * tile_n
    x_p = jnp.pad(x2d, ((0, n_pad - N), (0, 0))) if n_pad != N else x2d

    out = pl.pallas_call(
        _decoder_kernel,
        out_shape=jax.ShapeDtypeStruct((n_pad, V), jnp.float32),
        grid_spec=pltpu.PrefetchScalarGridSpec(
            num_scalar_prefetch=0,
            grid=(n_pad // tile_n,),
            in_specs=[
                pl.BlockSpec((tile_n, H), lambda i: (i, 0)),
                pl.BlockSpec((H, V), lambda i: (0, 0)),
                pl.BlockSpec((1, V), lambda i: (0, 0)),
            ],
            out_specs=pl.BlockSpec((tile_n, V), lambda i: (i, 0)),
        ),
        compiler_params=pltpu.CompilerParams(
            dimension_semantics=("parallel",)),
    )(x_p, dec_w_t, dec_b_row)
    return out[:N]


# ----------------------------------------------------------------------------
# One-time parameter preparation (transpose / fuse biases / cast — not per call).
# ----------------------------------------------------------------------------
def prepare_params(raw):
    p = {"enc_w": raw["enc_w"]}
    for l in range(2):
        w_ih = raw[f"w_ih_l{l}"]                                   # (4H, I_l)
        w_hh = raw[f"w_hh_l{l}"]                                   # (4H, H)
        H = w_hh.shape[1]
        p[f"w_ih_t_l{l}"] = w_ih.T.astype(jnp.bfloat16)            # (I_l, 4H)
        p[f"w_hh_t_l{l}"] = w_hh.T.astype(jnp.bfloat16)            # (H, 4H)
        p[f"b_l{l}"] = (raw[f"b_ih_l{l}"] + raw[f"b_hh_l{l}"]).reshape(1, 4 * H)
    p["dec_w_t"] = raw["dec_w"].T.astype(jnp.bfloat16)             # (H, V)
    p["dec_b_row"] = raw["dec_b"].reshape(1, -1)                   # (1, V)
    return p


# ----------------------------------------------------------------------------
# Full model forward (matches RNNModel.forward in eval mode).
# ----------------------------------------------------------------------------
def rnn_model_forward(params, tokens, hidden):
    emb = params["enc_w"][tokens]                     # (S, B, ninp)  XLA gather (glue)
    h_in, c_in = hidden                               # (1, 2, B, H) each
    h0s, c0s = h_in[0], c_in[0]                       # (2, B, H)

    y, hT, cT = lstm2_fused(emb, h0s, c0s,
                            params["w_ih_t_l0"], params["w_hh_t_l0"], params["b_l0"],
                            params["w_ih_t_l1"], params["w_hh_t_l1"], params["b_l1"])

    S, B, H = y.shape
    decoded = decoder_logsoftmax(y.reshape(S * B, H),
                                 params["dec_w_t"], params["dec_b_row"])
    return decoded, (hT[None], cT[None])              # each (1, 2, B, H)


# ----------------------------------------------------------------------------
# Pure-JAX reference for sanity checking (uses the raw f32 parameters).
# ----------------------------------------------------------------------------
def lstm_layer_ref(x, h0, c0, w_ih, w_hh, b_ih, b_hh):
    def step(carry, x_t):
        h, c = carry
        gates = x_t @ w_ih.T + b_ih + h @ w_hh.T + b_hh
        i, f, g, o = jnp.split(gates, 4, axis=-1)
        i = jax.nn.sigmoid(i); f = jax.nn.sigmoid(f)
        g = jnp.tanh(g); o = jax.nn.sigmoid(o)
        c = f * c + i * g
        h = o * jnp.tanh(c)
        return (h, c), h
    (hT, cT), ys = jax.lax.scan(step, (h0, c0), x)
    return ys, hT, cT


def rnn_model_ref(raw, tokens, hidden):
    emb = raw["enc_w"][tokens]
    h0s, c0s = hidden[0][0], hidden[1][0]
    out = emb
    hs, cs = [], []
    for l in range(2):
        out, hT, cT = lstm_layer_ref(out, h0s[l], c0s[l],
                                     raw[f"w_ih_l{l}"], raw[f"w_hh_l{l}"],
                                     raw[f"b_ih_l{l}"], raw[f"b_hh_l{l}"])
        hs.append(hT); cs.append(cT)
    S, B, H = out.shape
    logits = out.reshape(S * B, H) @ raw["dec_w"].T + raw["dec_b"]
    logp = jax.nn.log_softmax(logits, axis=1)
    return logp, (jnp.stack(hs)[None], jnp.stack(cs)[None])


# ----------------------------------------------------------------------------
if __name__ == "__main__":
    ntoken, ninp, nhid = 64, 32, 32
    seq, bsz = 8, 2

    key = jax.random.PRNGKey(0)
    ks = jax.random.split(key, 16)
    k_lstm = 1.0 / math.sqrt(nhid)

    raw = {
        "enc_w": jax.random.uniform(ks[0], (ntoken, ninp), jnp.float32, -0.1, 0.1),
        "dec_w": jax.random.uniform(ks[1], (ntoken, nhid), jnp.float32, -0.1, 0.1),
        "dec_b": jnp.zeros((ntoken,), jnp.float32),
    }
    in_sizes = [ninp, nhid]
    for l in range(2):
        base = 2 + 4 * l
        raw[f"w_ih_l{l}"] = jax.random.uniform(
            ks[base + 0], (4 * nhid, in_sizes[l]), jnp.float32, -k_lstm, k_lstm)
        raw[f"w_hh_l{l}"] = jax.random.uniform(
            ks[base + 1], (4 * nhid, nhid), jnp.float32, -k_lstm, k_lstm)
        raw[f"b_ih_l{l}"] = jax.random.uniform(
            ks[base + 2], (4 * nhid,), jnp.float32, -k_lstm, k_lstm)
        raw[f"b_hh_l{l}"] = jax.random.uniform(
            ks[base + 3], (4 * nhid,), jnp.float32, -k_lstm, k_lstm)

    params = prepare_params(raw)

    tokens = jax.random.randint(ks[10], (seq, bsz), 0, ntoken, dtype=jnp.int32)
    hidden0 = (jnp.zeros((1, 2, bsz, nhid), jnp.float32),
               jnp.zeros((1, 2, bsz, nhid), jnp.float32))

    fwd = jax.jit(rnn_model_forward)
    logp, (h_n, c_n) = fwd(params, tokens, hidden0)
    jax.block_until_ready((logp, h_n, c_n))

    # Sanity check against the pure-JAX f32 reference (kernel uses bf16 matmuls).
    logp_r, (h_r, c_r) = rnn_model_ref(raw, tokens, hidden0)
    np.testing.assert_allclose(np.asarray(logp), np.asarray(logp_r), atol=3e-2, rtol=3e-2)
    np.testing.assert_allclose(np.asarray(h_n), np.asarray(h_r), atol=3e-2, rtol=3e-2)
    np.testing.assert_allclose(np.asarray(c_n), np.asarray(c_r), atol=3e-2, rtol=3e-2)

    assert logp.shape == (seq * bsz, ntoken)
    assert h_n.shape == (1, 2, bsz, nhid) and c_n.shape == (1, 2, bsz, nhid)
    print("KERNEL_OK")
</pallas_src>

<mosaic_0001>
module attributes {stable_mosaic.version = 11 : i64} {
  func.func @_decoder_kernel(%arg0: i32, %arg1: memref<8x32xf32, #tpu.memory_space<vmem>>, %arg2: memref<32x64xbf16, #tpu.memory_space<vmem>>, %arg3: memref<1x64xf32, #tpu.memory_space<vmem>>, %arg4: memref<8x64xf32, #tpu.memory_space<vmem>>) attributes {dimension_semantics = [#tpu.dimension_semantics<parallel>], iteration_bounds = array<i64: 2>, scalar_prefetch = 0 : i64, scratch_operands = 0 : i64, tpu.core_type = #tpu.core_type<tc>, window_params = [{transform_indices = @transform_0, window_bounds = array<i64: 8, 32>}, {pipeline_mode = #tpu.pipeline_mode<synchronous>, transform_indices = @transform_1, window_bounds = array<i64: 32, 64>}, {pipeline_mode = #tpu.pipeline_mode<synchronous>, transform_indices = @transform_2, window_bounds = array<i64: 1, 64>}, {transform_indices = @transform_3, window_bounds = array<i64: 8, 64>}]} {
    %c0 = arith.constant 0 : index
    %c0_0 = arith.constant 0 : index
    %0 = vector.load %arg1[%c0, %c0_0] : memref<8x32xf32, #tpu.memory_space<vmem>>, vector<8x32xf32>
    %1 = arith.truncf %0 : vector<8x32xf32> to vector<8x32xbf16>
    %c0_1 = arith.constant 0 : index
    %c0_2 = arith.constant 0 : index
    %2 = vector.load %arg2[%c0_1, %c0_2] : memref<32x64xbf16, #tpu.memory_space<vmem>>, vector<32x64xbf16>
    %cst = arith.constant dense<0.000000e+00> : vector<8x64xf32>
    %3 = tpu.matmul %1, %2, %cst {dimension_numbers = #tpu.dot_dimension_numbers<[1], [0], [0], [1], [0, 0, 1, 1], [], []>} : vector<8x32xbf16>, vector<32x64xbf16>, vector<8x64xf32> -> vector<8x64xf32>
    %c0_3 = arith.constant 0 : index
    %c0_4 = arith.constant 0 : index
    %4 = vector.load %arg3[%c0_3, %c0_4] : memref<1x64xf32, #tpu.memory_space<vmem>>, vector<1x64xf32>
    %5 = vector.broadcast %4 : vector<1x64xf32> to vector<8x64xf32>
    %6 = arith.addf %3, %5 : vector<8x64xf32>
    %cst_5 = arith.constant dense<0xFF800000> : vector<8xf32>
    %7 = vector.multi_reduction <maximumf>, %6, %cst_5 [1] : vector<8x64xf32> to vector<8xf32>
    %8 = vector.shape_cast %7 : vector<8xf32> to vector<8x1xf32>
    %9 = vector.broadcast %8 : vector<8x1xf32> to vector<8x64xf32>
    %10 = arith.subf %6, %9 : vector<8x64xf32>
    %11 = math.exp %10 : vector<8x64xf32>
    %cst_6 = arith.constant dense<0.000000e+00> : vector<8xf32>
    %12 = vector.multi_reduction <add>, %11, %cst_6 [1] : vector<8x64xf32> to vector<8xf32>
    %13 = vector.shape_cast %12 : vector<8xf32> to vector<8x1xf32>
    %14 = math.log %13 : vector<8x1xf32>
    %15 = vector.broadcast %14 : vector<8x1xf32> to vector<8x64xf32>
    %16 = arith.subf %10, %15 : vector<8x64xf32>
    %c0_7 = arith.constant 0 : index
    %c0_8 = arith.constant 0 : index
    %17 = vector.load %arg4[%c0_7, %c0_8] : memref<8x64xf32, #tpu.memory_space<vmem>>, vector<8x64xf32>
    tpu.vector_store %arg4[%c0_7, %c0_8], %16 {strides = array<i32>} : memref<8x64xf32, #tpu.memory_space<vmem>>, vector<8x64xf32>,
    return
  }
  func.func @transform_0(%arg0: i32) -> (i32, i32) {
    %c0_i32 = arith.constant 0 : i32
    %c0_i32_0 = arith.constant 0 : i32
    return %arg0, %c0_i32 : i32, i32
  }
  func.func @transform_1(%arg0: i32) -> (i32, i32) {
    %c0_i32 = arith.constant 0 : i32
    %c0_i32_0 = arith.constant 0 : i32
    %c0_i32_1 = arith.constant 0 : i32
    return %c0_i32, %c0_i32_0 : i32, i32
  }
  func.func @transform_2(%arg0: i32) -> (i32, i32) {
    %c0_i32 = arith.constant 0 : i32
    %c0_i32_0 = arith.constant 0 : i32
    %c0_i32_1 = arith.constant 0 : i32
    return %c0_i32, %c0_i32_0 : i32, i32
  }
  func.func @transform_3(%arg0: i32) -> (i32, i32) {
    %c0_i32 = arith.constant 0 : i32
    %c0_i32_0 = arith.constant 0 : i32
    return %arg0, %c0_i32 : i32, i32
  }
}

module attributes {stable_mosaic.version = 11 : i64} {
  func.func @_lstm2_kernel(%arg0: i32, %arg1: memref<8x8x32xf32, #tpu.memory_space<vmem>>, %arg2: memref<2x8x32xf32, #tpu.memory_space<vmem>>, %arg3: memref<2x8x32xf32, #tpu.memory_space<vmem>>, %arg4: memref<32x128xbf16, #tpu.memory_space<any>>, %arg5: memref<32x128xbf16, #tpu.memory_space<any>>, %arg6: memref<1x128xf32, #tpu.memory_space<vmem>>, %arg7: memref<32x128xbf16, #tpu.memory_space<any>>, %arg8: memref<32x128xbf16, #tpu.memory_space<any>>, %arg9: memref<1x128xf32, #tpu.memory_space<vmem>>, %arg10: memref<8x8x32xf32, #tpu.memory_space<vmem>>, %arg11: memref<2x8x32xf32, #tpu.memory_space<vmem>>, %arg12: memref<2x8x32xf32, #tpu.memory_space<vmem>>, %arg13: memref<32x128xbf16, #tpu.memory_space<vmem>>, %arg14: memref<32x128xbf16, #tpu.memory_space<vmem>>, %arg15: memref<32x128xbf16, #tpu.memory_space<vmem>>, %arg16: memref<32x128xbf16, #tpu.memory_space<vmem>>, %arg17: memref<2x8x32xf32, #tpu.memory_space<vmem>>, %arg18: memref<2x8x32xf32, #tpu.memory_space<vmem>>, %arg19: memref<8x8x32xf32, #tpu.memory_space<vmem>>, %arg20: memref<4x!tpu.dma_semaphore, #tpu.memory_space<semaphore_mem>>) attributes {dimension_semantics = [#tpu.dimension_semantics<arbitrary>], iteration_bounds = array<i64: 1>, scalar_prefetch = 0 : i64, scratch_operands = 8 : i64, tpu.core_type = #tpu.core_type<tc>, window_params = [{transform_indices = @transform_0, window_bounds = array<i64: 8, 8, 32>}, {pipeline_mode = #tpu.pipeline_mode<synchronous>, transform_indices = @transform_1, window_bounds = array<i64: 2, 8, 32>}, {pipeline_mode = #tpu.pipeline_mode<synchronous>, transform_indices = @transform_2, window_bounds = array<i64: 2, 8, 32>}, {}, {}, {pipeline_mode = #tpu.pipeline_mode<synchronous>, transform_indices = @transform_5, window_bounds = array<i64: 1, 128>}, {}, {}, {pipeline_mode = #tpu.pipeline_mode<synchronous>, transform_indices = @transform_8, window_bounds = array<i64: 1, 128>}, {transform_indices = @transform_9, window_bounds = array<i64: 8, 8, 32>}, {pipeline_mode = #tpu.pipeline_mode<synchronous>, transform_indices = @transform_10, window_bounds = array<i64: 2, 8, 32>}, {pipeline_mode = #tpu.pipeline_mode<synchronous>, transform_indices = @transform_11, window_bounds = array<i64: 2, 8, 32>}]} {
    %c0_i32 = arith.constant 0 : i32
    %0 = arith.cmpi eq, %arg0, %c0_i32 : i32
    %1 = arith.extui %0 : i1 to i32
    %c0_i32_0 = arith.constant 0 : i32
    %2 = arith.cmpi ne, %1, %c0_i32_0 : i32
    scf.if %2 {
      %c0_i32_150 = arith.constant 0 : i32
      %574 = tpu.memref_slice %arg20[%c0_i32_150] : memref<4x!tpu.dma_semaphore, #tpu.memory_space<semaphore_mem>> -> memref<1x!tpu.dma_semaphore, #tpu.memory_space<semaphore_mem>>
      %575 = tpu.memref_squeeze %574 : memref<1x!tpu.dma_semaphore, #tpu.memory_space<semaphore_mem>> -> memref<!tpu.dma_semaphore, #tpu.memory_space<semaphore_mem>>
      tpu.enqueue_dma source(%arg4 : memref<32x128xbf16, #tpu.memory_space<any>>) target(%arg13 : memref<32x128xbf16, #tpu.memory_space<vmem>>) target_semaphore(%575 : memref<!tpu.dma_semaphore, #tpu.memory_space<semaphore_mem>>)
      %c1_i32 = arith.constant 1 : i32
      %576 = tpu.memref_slice %arg20[%c1_i32] : memref<4x!tpu.dma_semaphore, #tpu.memory_space<semaphore_mem>> -> memref<1x!tpu.dma_semaphore, #tpu.memory_space<semaphore_mem>>
      %577 = tpu.memref_squeeze %576 : memref<1x!tpu.dma_semaphore, #tpu.memory_space<semaphore_mem>> -> memref<!tpu.dma_semaphore, #tpu.memory_space<semaphore_mem>>
      tpu.enqueue_dma source(%arg5 : memref<32x128xbf16, #tpu.memory_space<any>>) target(%arg14 : memref<32x128xbf16, #tpu.memory_space<vmem>>) target_semaphore(%577 : memref<!tpu.dma_semaphore, #tpu.memory_space<semaphore_mem>>)
      %c2_i32 = arith.constant 2 : i32
      %578 = tpu.memref_slice %arg20[%c2_i32] : memref<4x!tpu.dma_semaphore, #tpu.memory_space<semaphore_mem>> -> memref<1x!tpu.dma_semaphore, #tpu.memory_space<semaphore_mem>>
      %579 = tpu.memref_squeeze %578 : memref<1x!tpu.dma_semaphore, #tpu.memory_space<semaphore_mem>> -> memref<!tpu.dma_semaphore, #tpu.memory_space<semaphore_mem>>
      tpu.enqueue_dma source(%arg7 : memref<32x128xbf16, #tpu.memory_space<any>>) target(%arg15 : memref<32x128xbf16, #tpu.memory_space<vmem>>) target_semaphore(%579 : memref<!tpu.dma_semaphore, #tpu.memory_space<semaphore_mem>>)
      %c3_i32 = arith.constant 3 : i32
      %580 = tpu.memref_slice %arg20[%c3_i32] : memref<4x!tpu.dma_semaphore, #tpu.memory_space<semaphore_mem>> -> memref<1x!tpu.dma_semaphore, #tpu.memory_space<semaphore_mem>>
      %581 = tpu.memref_squeeze %580 : memref<1x!tpu.dma_semaphore, #tpu.memory_space<semaphore_mem>> -> memref<!tpu.dma_semaphore, #tpu.memory_space<semaphore_mem>>
      tpu.enqueue_dma source(%arg8 : memref<32x128xbf16, #tpu.memory_space<any>>) target(%arg16 : memref<32x128xbf16, #tpu.memory_space<vmem>>) target_semaphore(%581 : memref<!tpu.dma_semaphore, #tpu.memory_space<semaphore_mem>>)
      %c0_i32_151 = arith.constant 0 : i32
      %582 = tpu.memref_slice %arg20[%c0_i32_151] : memref<4x!tpu.dma_semaphore, #tpu.memory_space<semaphore_mem>> -> memref<1x!tpu.dma_semaphore, #tpu.memory_space<semaphore_mem>>
      %583 = tpu.memref_squeeze %582 : memref<1x!tpu.dma_semaphore, #tpu.memory_space<semaphore_mem>> -> memref<!tpu.dma_semaphore, #tpu.memory_space<semaphore_mem>>
      tpu.wait_dma2 semaphore(%583 : memref<!tpu.dma_semaphore, #tpu.memory_space<semaphore_mem>>) src(%arg4 : memref<32x128xbf16, #tpu.memory_space<any>>) dst(%arg13 : memref<32x128xbf16, #tpu.memory_space<vmem>>)
      %c1_i32_152 = arith.constant 1 : i32
      %584 = tpu.memref_slice %arg20[%c1_i32_152] : memref<4x!tpu.dma_semaphore, #tpu.memory_space<semaphore_mem>> -> memref<1x!tpu.dma_semaphore, #tpu.memory_space<semaphore_mem>>
      %585 = tpu.memref_squeeze %584 : memref<1x!tpu.dma_semaphore, #tpu.memory_space<semaphore_mem>> -> memref<!tpu.dma_semaphore, #tpu.memory_space<semaphore_mem>>
      tpu.wait_dma2 semaphore(%585 : memref<!tpu.dma_semaphore, #tpu.memory_space<semaphore_mem>>) src(%arg5 : memref<32x128xbf16, #tpu.memory_space<any>>) dst(%arg14 : memref<32x128xbf16, #tpu.memory_space<vmem>>)
      %c2_i32_153 = arith.constant 2 : i32
      %586 = tpu.memref_slice %arg20[%c2_i32_153] : memref<4x!tpu.dma_semaphore, #tpu.memory_space<semaphore_mem>> -> memref<1x!tpu.dma_semaphore, #tpu.memory_space<semaphore_mem>>
      %587 = tpu.memref_squeeze %586 : memref<1x!tpu.dma_semaphore, #tpu.memory_space<semaphore_mem>> -> memref<!tpu.dma_semaphore, #tpu.memory_space<semaphore_mem>>
      tpu.wait_dma2 semaphore(%587 : memref<!tpu.dma_semaphore, #tpu.memory_space<semaphore_mem>>) src(%arg7 : memref<32x128xbf16, #tpu.memory_space<any>>) dst(%arg15 : memref<32x128xbf16, #tpu.memory_space<vmem>>)
      %c3_i32_154 = arith.constant 3 : i32
      %588 = tpu.memref_slice %arg20[%c3_i32_154] : memref<4x!tpu.dma_semaphore, #tpu.memory_space<semaphore_mem>> -> memref<1x!tpu.dma_semaphore, #tpu.memory_space<semaphore_mem>>
      %589 = tpu.memref_squeeze %588 : memref<1x!tpu.dma_semaphore, #tpu.memory_space<semaphore_mem>> -> memref<!tpu.dma_semaphore, #tpu.memory_space<semaphore_mem>>
      tpu.wait_dma2 semaphore(%589 : memref<!tpu.dma_semaphore, #tpu.memory_space<semaphore_mem>>) src(%arg8 : memref<32x128xbf16, #tpu.memory_space<any>>) dst(%arg16 : memref<32x128xbf16, #tpu.memory_space<vmem>>)
      %c0_155 = arith.constant 0 : index
      %c0_156 = arith.constant 0 : index
      %c0_157 = arith.constant 0 : index
      %590 = vector.load %arg2[%c0_155, %c0_156, %c0_157] : memref<2x8x32xf32, #tpu.memory_space<vmem>>, vector<2x8x32xf32>
      %c0_158 = arith.constant 0 : index
      %c0_159 = arith.constant 0 : index
      %c0_160 = arith.constant 0 : index
      %591 = vector.load %arg17[%c0_158, %c0_159, %c0_160] : memref<2x8x32xf32, #tpu.memory_space<vmem>>, vector<2x8x32xf32>
      tpu.vector_store %arg17[%c0_158, %c0_159, %c0_160], %590 {strides = array<i32>} : memref<2x8x32xf32, #tpu.memory_space<vmem>>, vector<2x8x32xf32>,
      %c0_161 = arith.constant 0 : index
      %c0_162 = arith.constant 0 : index
      %c0_163 = arith.constant 0 : index
      %592 = vector.load %arg3[%c0_161, %c0_162, %c0_163] : memref<2x8x32xf32, #tpu.memory_space<vmem>>, vector<2x8x32xf32>
      %c0_164 = arith.constant 0 : index
      %c0_165 = arith.constant 0 : index
      %c0_166 = arith.constant 0 : index
      %593 = vector.load %arg18[%c0_164, %c0_165, %c0_166] : memref<2x8x32xf32, #tpu.memory_space<vmem>>, vector<2x8x32xf32>
      tpu.vector_store %arg18[%c0_164, %c0_165, %c0_166], %592 {strides = array<i32>} : memref<2x8x32xf32, #tpu.memory_space<vmem>>, vector<2x8x32xf32>,
    } else {
    }
    %c0 = arith.constant 0 : index
    %c0_1 = arith.constant 0 : index
    %3 = vector.load %arg13[%c0, %c0_1] : memref<32x128xbf16, #tpu.memory_space<vmem>>, vector<32x128xbf16>
    %c0_2 = arith.constant 0 : index
    %c0_3 = arith.constant 0 : index
    %4 = vector.load %arg14[%c0_2, %c0_3] : memref<32x128xbf16, #tpu.memory_space<vmem>>, vector<32x128xbf16>
    %c0_4 = arith.constant 0 : index
    %c0_5 = arith.constant 0 : index
    %5 = vector.load %arg15[%c0_4, %c0_5] : memref<32x128xbf16, #tpu.memory_space<vmem>>, vector<32x128xbf16>
    %c0_6 = arith.constant 0 : index
    %c0_7 = arith.constant 0 : index
    %6 = vector.load %arg16[%c0_6, %c0_7] : memref<32x128xbf16, #tpu.memory_space<vmem>>, vector<32x128xbf16>
    %c0_8 = arith.constant 0 : index
    %c0_9 = arith.constant 0 : index
    %7 = vector.load %arg6[%c0_8, %c0_9] : memref<1x128xf32, #tpu.memory_space<vmem>>, vector<1x128xf32>
    %c0_10 = arith.constant 0 : index
    %c0_11 = arith.constant 0 : index
    %8 = vector.load %arg9[%c0_10, %c0_11] : memref<1x128xf32, #tpu.memory_space<vmem>>, vector<1x128xf32>
    %c0_12 = arith.constant 0 : index
    %c0_13 = arith.constant 0 : index
    %c0_14 = arith.constant 0 : index
    %9 = vector.load %arg1[%c0_12, %c0_13, %c0_14] : memref<8x8x32xf32, #tpu.memory_space<vmem>>, vector<8x8x32xf32>
    %10 = vector.shape_cast %9 : vector<8x8x32xf32> to vector<64x32xf32>
    %11 = arith.truncf %10 : vector<64x32xf32> to vector<64x32xbf16>
    %cst = arith.constant dense<0.000000e+00> : vector<64x128xf32>
    %12 = tpu.matmul %11, %3, %cst {dimension_numbers = #tpu.dot_dimension_numbers<[1], [0], [0], [1], [0, 0, 1, 1], [], []>} : vector<64x32xbf16>, vector<32x128xbf16>, vector<64x128xf32> -> vector<64x128xf32>
    %13 = vector.broadcast %7 : vector<1x128xf32> to vector<64x128xf32>
    %14 = arith.addf %12, %13 : vector<64x128xf32>
    %15 = vector.shape_cast %14 : vector<64x128xf32> to vector<8x8x128xf32>
    %c0_15 = arith.constant 0 : index
    %c0_16 = arith.constant 0 : index
    %c0_17 = arith.constant 0 : index
    %16 = vector.load %arg17[%c0_15, %c0_16, %c0_17] : memref<2x8x32xf32, #tpu.memory_space<vmem>>, vector<1x8x32xf32>
    %17 = vector.shape_cast %16 : vector<1x8x32xf32> to vector<8x32xf32>
    %c0_18 = arith.constant 0 : index
    %c0_19 = arith.constant 0 : index
    %c0_20 = arith.constant 0 : index
    %18 = vector.load %arg18[%c0_18, %c0_19, %c0_20] : memref<2x8x32xf32, #tpu.memory_space<vmem>>, vector<1x8x32xf32>
    %19 = vector.shape_cast %18 : vector<1x8x32xf32> to vector<8x32xf32>
    %20 = vector.extract_strided_slice %15 {offsets = [0, 0, 0], sizes = [1, 8, 128], strides = [1, 1, 1]} : vector<8x8x128xf32> to vector<1x8x128xf32>
    %21 = vector.shape_cast %20 : vector<1x8x128xf32> to vector<8x128xf32>
    %22 = arith.truncf %17 : vector<8x32xf32> to vector<8x32xbf16>
    %cst_21 = arith.constant dense<0.000000e+00> : vector<8x128xf32>
    %23 = tpu.matmul %22, %4, %cst_21 {dimension_numbers = #tpu.dot_dimension_numbers<[1], [0], [0], [1], [0, 0, 1, 1], [], []>} : vector<8x32xbf16>, vector<32x128xbf16>, vector<8x128xf32> -> vector<8x128xf32>
    %24 = arith.addf %21, %23 : vector<8x128xf32>
    %25 = vector.extract_strided_slice %24 {offsets = [0, 0], sizes = [8, 32], strides = [1, 1]} : vector<8x128xf32> to vector<8x32xf32>
    %26 = arith.negf %25 : vector<8x32xf32>
    %27 = math.exp %26 : vector<8x32xf32>
    %cst_22 = arith.constant 1.000000e+00 : f32
    %28 = vector.broadcast %cst_22 : f32 to vector<8x32xf32>
    %29 = arith.addf %28, %27 : vector<8x32xf32>
    %30 = arith.divf %28, %29 : vector<8x32xf32>
    %31 = vector.extract_strided_slice %24 {offsets = [0, 32], sizes = [8, 32], strides = [1, 1]} : vector<8x128xf32> to vector<8x32xf32>
    %32 = arith.negf %31 : vector<8x32xf32>
    %33 = math.exp %32 : vector<8x32xf32>
    %cst_23 = arith.constant 1.000000e+00 : f32
    %34 = vector.broadcast %cst_23 : f32 to vector<8x32xf32>
    %35 = arith.addf %34, %33 : vector<8x32xf32>
    %36 = arith.divf %34, %35 : vector<8x32xf32>
    %37 = vector.extract_strided_slice %24 {offsets = [0, 64], sizes = [8, 32], strides = [1, 1]} : vector<8x128xf32> to vector<8x32xf32>
    %38 = math.tanh %37 : vector<8x32xf32>
    %39 = vector.extract_strided_slice %24 {offsets = [0, 96], sizes = [8, 32], strides = [1, 1]} : vector<8x128xf32> to vector<8x32xf32>
    %40 = arith.negf %39 : vector<8x32xf32>
    %41 = math.exp %40 : vector<8x32xf32>
    %cst_24 = arith.constant 1.000000e+00 : f32
    %42 = vector.broadcast %cst_24 : f32 to vector<8x32xf32>
    %43 = arith.addf %42, %41 : vector<8x32xf32>
    %44 = arith.divf %42, %43 : vector<8x32xf32>
    %45 = arith.mulf %36, %19 : vector<8x32xf32>
    %46 = arith.mulf %30, %38 : vector<8x32xf32>
    %47 = arith.addf %45, %46 : vector<8x32xf32>
    %48 = math.tanh %47 : vector<8x32xf32>
    %49 = arith.mulf %44, %48 : vector<8x32xf32>
    %c0_25 = arith.constant 0 : index
    %c0_26 = arith.constant 0 : index
    %c0_27 = arith.constant 0 : index
    %50 = vector.load %arg19[%c0_25, %c0_26, %c0_27] : memref<8x8x32xf32, #tpu.memory_space<vmem>>, vector<1x8x32xf32>
    %51 = vector.shape_cast %50 : vector<1x8x32xf32> to vector<8x32xf32>
    %52 = vector.shape_cast %49 : vector<8x32xf32> to vector<1x8x32xf32>
    tpu.vector_store %arg19[%c0_25, %c0_26, %c0_27], %52 {strides = array<i32>} : memref<8x8x32xf32, #tpu.memory_space<vmem>>, vector<1x8x32xf32>,
    %53 = vector.extract_strided_slice %15 {offsets = [1, 0, 0], sizes = [1, 8, 128], strides = [1, 1, 1]} : vector<8x8x128xf32> to vector<1x8x128xf32>
    %54 = vector.shape_cast %53 : vector<1x8x128xf32> to vector<8x128xf32>
    %55 = arith.truncf %49 : vector<8x32xf32> to vector<8x32xbf16>
    %cst_28 = arith.constant dense<0.000000e+00> : vector<8x128xf32>
    %56 = tpu.matmul %55, %4, %cst_28 {dimension_numbers = #tpu.dot_dimension_numbers<[1], [0], [0], [1], [0, 0, 1, 1], [], []>} : vector<8x32xbf16>, vector<32x128xbf16>, vector<8x128xf32> -> vector<8x128xf32>
    %57 = arith.addf %54, %56 : vector<8x128xf32>
    %58 = vector.extract_strided_slice %57 {offsets = [0, 0], sizes = [8, 32], strides = [1, 1]} : vector<8x128xf32> to vector<8x32xf32>
    %59 = arith.negf %58 : vector<8x32xf32>
    %60 = math.exp %59 : vector<8x32xf32>
    %cst_29 = arith.constant 1.000000e+00 : f32
    %61 = vector.broadcast %cst_29 : f32 to vector<8x32xf32>
    %62 = arith.addf %61, %60 : vector<8x32xf32>
    %63 = arith.divf %61, %62 : vector<8x32xf32>
    %64 = vector.extract_strided_slice %57 {offsets = [0, 32], sizes = [8, 32], strides = [1, 1]} : vector<8x128xf32> to vector<8x32xf32>
    %65 = arith.negf %64 : vector<8x32xf32>
    %66 = math.exp %65 : vector<8x32xf32>
    %cst_30 = arith.constant 1.000000e+00 : f32
    %67 = vector.broadcast %cst_30 : f32 to vector<8x32xf32>
    %68 = arith.addf %67, %66 : vector<8x32xf32>
    %69 = arith.divf %67, %68 : vector<8x32xf32>
    %70 = vector.extract_strided_slice %57 {offsets = [0, 64], sizes = [8, 32], strides = [1, 1]} : vector<8x128xf32> to vector<8x32xf32>
    %71 = math.tanh %70 : vector<8x32xf32>
    %72 = vector.extract_strided_slice %57 {offsets = [0, 96], sizes = [8, 32], strides = [1, 1]} : vector<8x128xf32> to vector<8x32xf32>
    %73 = arith.negf %72 : vector<8x32xf32>
    %74 = math.exp %73 : vector<8x32xf32>
    %cst_31 = arith.constant 1.000000e+00 : f32
    %75 = vector.broadcast %cst_31 : f32 to vector<8x32xf32>
    %76 = arith.addf %75, %74 : vector<8x32xf32>
    %77 = arith.divf %75, %76 : vector<8x32xf32>
    %78 = arith.mulf %69, %47 : vector<8x32xf32>
    %79 = arith.mulf %63, %71 : vector<8x32xf32>
    %80 = arith.addf %78, %79 : vector<8x32xf32>
    %81 = math.tanh %80 : vector<8x32xf32>
    %82 = arith.mulf %77, %81 : vector<8x32xf32>
    %c1 = arith.constant 1 : index
    %c0_32 = arith.constant 0 : index
    %c0_33 = arith.constant 0 : index
    %83 = vector.load %arg19[%c1, %c0_32, %c0_33] : memref<8x8x32xf32, #tpu.memory_space<vmem>>, vector<1x8x32xf32>
    %84 = vector.shape_cast %83 : vector<1x8x32xf32> to vector<8x32xf32>
    %85 = vector.shape_cast %82 : vector<8x32xf32> to vector<1x8x32xf32>
    tpu.vector_store %arg19[%c1, %c0_32, %c0_33], %85 {strides = array<i32>} : memref<8x8x32xf32, #tpu.memory_space<vmem>>, vector<1x8x32xf32>,
    %86 = vector.extract_strided_slice %15 {offsets = [2, 0, 0], sizes = [1, 8, 128], strides = [1, 1, 1]} : vector<8x8x128xf32> to vector<1x8x128xf32>
    %87 = vector.shape_cast %86 : vector<1x8x128xf32> to vector<8x128xf32>
    %88 = arith.truncf %82 : vector<8x32xf32> to vector<8x32xbf16>
    %cst_34 = arith.constant dense<0.000000e+00> : vector<8x128xf32>
    %89 = tpu.matmul %88, %4, %cst_34 {dimension_numbers = #tpu.dot_dimension_numbers<[1], [0], [0], [1], [0, 0, 1, 1], [], []>} : vector<8x32xbf16>, vector<32x128xbf16>, vector<8x128xf32> -> vector<8x128xf32>
    %90 = arith.addf %87, %89 : vector<8x128xf32>
    %91 = vector.extract_strided_slice %90 {offsets = [0, 0], sizes = [8, 32], strides = [1, 1]} : vector<8x128xf32> to vector<8x32xf32>
    %92 = arith.negf %91 : vector<8x32xf32>
    %93 = math.exp %92 : vector<8x32xf32>
    %cst_35 = arith.constant 1.000000e+00 : f32
    %94 = vector.broadcast %cst_35 : f32 to vector<8x32xf32>
    %95 = arith.addf %94, %93 : vector<8x32xf32>
    %96 = arith.divf %94, %95 : vector<8x32xf32>
    %97 = vector.extract_strided_slice %90 {offsets = [0, 32], sizes = [8, 32], strides = [1, 1]} : vector<8x128xf32> to vector<8x32xf32>
    %98 = arith.negf %97 : vector<8x32xf32>
    %99 = math.exp %98 : vector<8x32xf32>
    %cst_36 = arith.constant 1.000000e+00 : f32
    %100 = vector.broadcast %cst_36 : f32 to vector<8x32xf32>
    %101 = arith.addf %100, %99 : vector<8x32xf32>
    %102 = arith.divf %100, %101 : vector<8x32xf32>
    %103 = vector.extract_strided_slice %90 {offsets = [0, 64], sizes = [8, 32], strides = [1, 1]} : vector<8x128xf32> to vector<8x32xf32>
    %104 = math.tanh %103 : vector<8x32xf32>
    %105 = vector.extract_strided_slice %90 {offsets = [0, 96], sizes = [8, 32], strides = [1, 1]} : vector<8x128xf32> to vector<8x32xf32>
    %106 = arith.negf %105 : vector<8x32xf32>
    %107 = math.exp %106 : vector<8x32xf32>
    %cst_37 = arith.constant 1.000000e+00 : f32
    %108 = vector.broadcast %cst_37 : f32 to vector<8x32xf32>
    %109 = arith.addf %108, %107 : vector<8x32xf32>
    %110 = arith.divf %108, %109 : vector<8x32xf32>
    %111 = arith.mulf %102, %80 : vector<8x32xf32>
    %112 = arith.mulf %96, %104 : vector<8x32xf32>
    %113 = arith.addf %111, %112 : vector<8x32xf32>
    %114 = math.tanh %113 : vector<8x32xf32>
    %115 = arith.mulf %110, %114 : vector<8x32xf32>
    %c2 = arith.constant 2 : index
    %c0_38 = arith.constant 0 : index
    %c0_39 = arith.constant 0 : index
    %116 = vector.load %arg19[%c2, %c0_38, %c0_39] : memref<8x8x32xf32, #tpu.memory_space<vmem>>, vector<1x8x32xf32>
    %117 = vector.shape_cast %116 : vector<1x8x32xf32> to vector<8x32xf32>
    %118 = vector.shape_cast %115 : vector<8x32xf32> to vector<1x8x32xf32>
    tpu.vector_store %arg19[%c2, %c0_38, %c0_39], %118 {strides = array<i32>} : memref<8x8x32xf32, #tpu.memory_space<vmem>>, vector<1x8x32xf32>,
    %119 = vector.extract_strided_slice %15 {offsets = [3, 0, 0], sizes = [1, 8, 128], strides = [1, 1, 1]} : vector<8x8x128xf32> to vector<1x8x128xf32>
    %120 = vector.shape_cast %119 : vector<1x8x128xf32> to vector<8x128xf32>
    %121 = arith.truncf %115 : vector<8x32xf32> to vector<8x32xbf16>
    %cst_40 = arith.constant dense<0.000000e+00> : vector<8x128xf32>
    %122 = tpu.matmul %121, %4, %cst_40 {dimension_numbers = #tpu.dot_dimension_numbers<[1], [0], [0], [1], [0, 0, 1, 1], [], []>} : vector<8x32xbf16>, vector<32x128xbf16>, vector<8x128xf32> -> vector<8x128xf32>
    %123 = arith.addf %120, %122 : vector<8x128xf32>
    %124 = vector.extract_strided_slice %123 {offsets = [0, 0], sizes = [8, 32], strides = [1, 1]} : vector<8x128xf32> to vector<8x32xf32>
    %125 = arith.negf %124 : vector<8x32xf32>
    %126 = math.exp %125 : vector<8x32xf32>
    %cst_41 = arith.constant 1.000000e+00 : f32
    %127 = vector.broadcast %cst_41 : f32 to vector<8x32xf32>
    %128 = arith.addf %127, %126 : vector<8x32xf32>
    %129 = arith.divf %127, %128 : vector<8x32xf32>
    %130 = vector.extract_strided_slice %123 {offsets = [0, 32], sizes = [8, 32], strides = [1, 1]} : vector<8x128xf32> to vector<8x32xf32>
    %131 = arith.negf %130 : vector<8x32xf32>
    %132 = math.exp %131 : vector<8x32xf32>
    %cst_42 = arith.constant 1.000000e+00 : f32
    %133 = vector.broadcast %cst_42 : f32 to vector<8x32xf32>
    %134 = arith.addf %133, %132 : vector<8x32xf32>
    %135 = arith.divf %133, %134 : vector<8x32xf32>
    %136 = vector.extract_strided_slice %123 {offsets = [0, 64], sizes = [8, 32], strides = [1, 1]} : vector<8x128xf32> to vector<8x32xf32>
    %137 = math.tanh %136 : vector<8x32xf32>
    %138 = vector.extract_strided_slice %123 {offsets = [0, 96], sizes = [8, 32], strides = [1, 1]} : vector<8x128xf32> to vector<8x32xf32>
    %139 = arith.negf %138 : vector<8x32xf32>
    %140 = math.exp %139 : vector<8x32xf32>
    %cst_43 = arith.constant 1.000000e+00 : f32
    %141 = vector.broadcast %cst_43 : f32 to vector<8x32xf32>
    %142 = arith.addf %141, %140 : vector<8x32xf32>
    %143 = arith.divf %141, %142 : vector<8x32xf32>
    %144 = arith.mulf %135, %113 : vector<8x32xf32>
    %145 = arith.mulf %129, %137 : vector<8x32xf32>
    %146 = arith.addf %144, %145 : vector<8x32xf32>
    %147 = math.tanh %146 : vector<8x32xf32>
    %148 = arith.mulf %143, %147 : vector<8x32xf32>
    %c3 = arith.constant 3 : index
    %c0_44 = arith.constant 0 : index
    %c0_45 = arith.constant 0 : index
    %149 = vector.load %arg19[%c3, %c0_44, %c0_45] : memref<8x8x32xf32, #tpu.memory_space<vmem>>, vector<1x8x32xf32>
    %150 = vector.shape_cast %149 : vector<1x8x32xf32> to vector<8x32xf32>
    %151 = vector.shape_cast %148 : vector<8x32xf32> to vector<1x8x32xf32>
    tpu.vector_store %arg19[%c3, %c0_44, %c0_45], %151 {strides = array<i32>} : memref<8x8x32xf32, #tpu.memory_space<vmem>>, vector<1x8x32xf32>,
    %152 = vector.extract_strided_slice %15 {offsets = [4, 0, 0], sizes = [1, 8, 128], strides = [1, 1, 1]} : vector<8x8x128xf32> to vector<1x8x128xf32>
    %153 = vector.shape_cast %152 : vector<1x8x128xf32> to vector<8x128xf32>
    %154 = arith.truncf %148 : vector<8x32xf32> to vector<8x32xbf16>
    %cst_46 = arith.constant dense<0.000000e+00> : vector<8x128xf32>
    %155 = tpu.matmul %154, %4, %cst_46 {dimension_numbers = #tpu.dot_dimension_numbers<[1], [0], [0], [1], [0, 0, 1, 1], [], []>} : vector<8x32xbf16>, vector<32x128xbf16>, vector<8x128xf32> -> vector<8x128xf32>
    %156 = arith.addf %153, %155 : vector<8x128xf32>
    %157 = vector.extract_strided_slice %156 {offsets = [0, 0], sizes = [8, 32], strides = [1, 1]} : vector<8x128xf32> to vector<8x32xf32>
    %158 = arith.negf %157 : vector<8x32xf32>
    %159 = math.exp %158 : vector<8x32xf32>
    %cst_47 = arith.constant 1.000000e+00 : f32
    %160 = vector.broadcast %cst_47 : f32 to vector<8x32xf32>
    %161 = arith.addf %160, %159 : vector<8x32xf32>
    %162 = arith.divf %160, %161 : vector<8x32xf32>
    %163 = vector.extract_strided_slice %156 {offsets = [0, 32], sizes = [8, 32], strides = [1, 1]} : vector<8x128xf32> to vector<8x32xf32>
    %164 = arith.negf %163 : vector<8x32xf32>
    %165 = math.exp %164 : vector<8x32xf32>
    %cst_48 = arith.constant 1.000000e+00 : f32
    %166 = vector.broadcast %cst_48 : f32 to vector<8x32xf32>
    %167 = arith.addf %166, %165 : vector<8x32xf32>
    %168 = arith.divf %166, %167 : vector<8x32xf32>
    %169 = vector.extract_strided_slice %156 {offsets = [0, 64], sizes = [8, 32], strides = [1, 1]} : vector<8x128xf32> to vector<8x32xf32>
    %170 = math.tanh %169 : vector<8x32xf32>
    %171 = vector.extract_strided_slice %156 {offsets = [0, 96], sizes = [8, 32], strides = [1, 1]} : vector<8x128xf32> to vector<8x32xf32>
    %172 = arith.negf %171 : vector<8x32xf32>
    %173 = math.exp %172 : vector<8x32xf32>
    %cst_49 = arith.constant 1.000000e+00 : f32
    %174 = vector.broadcast %cst_49 : f32 to vector<8x32xf32>
    %175 = arith.addf %174, %173 : vector<8x32xf32>
    %176 = arith.divf %174, %175 : vector<8x32xf32>
    %177 = arith.mulf %168, %146 : vector<8x32xf32>
    %178 = arith.mulf %162, %170 : vector<8x32xf32>
    %179 = arith.addf %177, %178 : vector<8x32xf32>
    %180 = math.tanh %179 : vector<8x32xf32>
    %181 = arith.mulf %176, %180 : vector<8x32xf32>
    %c4 = arith.constant 4 : index
    %c0_50 = arith.constant 0 : index
    %c0_51 = arith.constant 0 : index
    %182 = vector.load %arg19[%c4, %c0_50, %c0_51] : memref<8x8x32xf32, #tpu.memory_space<vmem>>, vector<1x8x32xf32>
    %183 = vector.shape_cast %182 : vector<1x8x32xf32> to vector<8x32xf32>
    %184 = vector.shape_cast %181 : vector<8x32xf32> to vector<1x8x32xf32>
    tpu.vector_store %arg19[%c4, %c0_50, %c0_51], %184 {strides = array<i32>} : memref<8x8x32xf32, #tpu.memory_space<vmem>>, vector<1x8x32xf32>,
    %185 = vector.extract_strided_slice %15 {offsets = [5, 0, 0], sizes = [1, 8, 128], strides = [1, 1, 1]} : vector<8x8x128xf32> to vector<1x8x128xf32>
    %186 = vector.shape_cast %185 : vector<1x8x128xf32> to vector<8x128xf32>
    %187 = arith.truncf %181 : vector<8x32xf32> to vector<8x32xbf16>
    %cst_52 = arith.constant dense<0.000000e+00> : vector<8x128xf32>
    %188 = tpu.matmul %187, %4, %cst_52 {dimension_numbers = #tpu.dot_dimension_numbers<[1], [0], [0], [1], [0, 0, 1, 1], [], []>} : vector<8x32xbf16>, vector<32x128xbf16>, vector<8x128xf32> -> vector<8x128xf32>
    %189 = arith.addf %186, %188 : vector<8x128xf32>
    %190 = vector.extract_strided_slice %189 {offsets = [0, 0], sizes = [8, 32], strides = [1, 1]} : vector<8x128xf32> to vector<8x32xf32>
    %191 = arith.negf %190 : vector<8x32xf32>
    %192 = math.exp %191 : vector<8x32xf32>
    %cst_53 = arith.constant 1.000000e+00 : f32
    %193 = vector.broadcast %cst_53 : f32 to vector<8x32xf32>
    %194 = arith.addf %193, %192 : vector<8x32xf32>
    %195 = arith.divf %193, %194 : vector<8x32xf32>
    %196 = vector.extract_strided_slice %189 {offsets = [0, 32], sizes = [8, 32], strides = [1, 1]} : vector<8x128xf32> to vector<8x32xf32>
    %197 = arith.negf %196 : vector<8x32xf32>
    %198 = math.exp %197 : vector<8x32xf32>
    %cst_54 = arith.constant 1.000000e+00 : f32
    %199 = vector.broadcast %cst_54 : f32 to vector<8x32xf32>
    %200 = arith.addf %199, %198 : vector<8x32xf32>
    %201 = arith.divf %199, %200 : vector<8x32xf32>
    %202 = vector.extract_strided_slice %189 {offsets = [0, 64], sizes = [8, 32], strides = [1, 1]} : vector<8x128xf32> to vector<8x32xf32>
    %203 = math.tanh %202 : vector<8x32xf32>
    %204 = vector.extract_strided_slice %189 {offsets = [0, 96], sizes = [8, 32], strides = [1, 1]} : vector<8x128xf32> to vector<8x32xf32>
    %205 = arith.negf %204 : vector<8x32xf32>
    %206 = math.exp %205 : vector<8x32xf32>
    %cst_55 = arith.constant 1.000000e+00 : f32
    %207 = vector.broadcast %cst_55 : f32 to vector<8x32xf32>
    %208 = arith.addf %207, %206 : vector<8x32xf32>
    %209 = arith.divf %207, %208 : vector<8x32xf32>
    %210 = arith.mulf %201, %179 : vector<8x32xf32>
    %211 = arith.mulf %195, %203 : vector<8x32xf32>
    %212 = arith.addf %210, %211 : vector<8x32xf32>
    %213 = math.tanh %212 : vector<8x32xf32>
    %214 = arith.mulf %209, %213 : vector<8x32xf32>
    %c5 = arith.constant 5 : index
    %c0_56 = arith.constant 0 : index
    %c0_57 = arith.constant 0 : index
    %215 = vector.load %arg19[%c5, %c0_56, %c0_57] : memref<8x8x32xf32, #tpu.memory_space<vmem>>, vector<1x8x32xf32>
    %216 = vector.shape_cast %215 : vector<1x8x32xf32> to vector<8x32xf32>
    %217 = vector.shape_cast %214 : vector<8x32xf32> to vector<1x8x32xf32>
    tpu.vector_store %arg19[%c5, %c0_56, %c0_57], %217 {strides = array<i32>} : memref<8x8x32xf32, #tpu.memory_space<vmem>>, vector<1x8x32xf32>,
    %218 = vector.extract_strided_slice %15 {offsets = [6, 0, 0], sizes = [1, 8, 128], strides = [1, 1, 1]} : vector<8x8x128xf32> to vector<1x8x128xf32>
    %219 = vector.shape_cast %218 : vector<1x8x128xf32> to vector<8x128xf32>
    %220 = arith.truncf %214 : vector<8x32xf32> to vector<8x32xbf16>
    %cst_58 = arith.constant dense<0.000000e+00> : vector<8x128xf32>
    %221 = tpu.matmul %220, %4, %cst_58 {dimension_numbers = #tpu.dot_dimension_numbers<[1], [0], [0], [1], [0, 0, 1, 1], [], []>} : vector<8x32xbf16>, vector<32x128xbf16>, vector<8x128xf32> -> vector<8x128xf32>
    %222 = arith.addf %219, %221 : vector<8x128xf32>
    %223 = vector.extract_strided_slice %222 {offsets = [0, 0], sizes = [8, 32], strides = [1, 1]} : vector<8x128xf32> to vector<8x32xf32>
    %224 = arith.negf %223 : vector<8x32xf32>
    %225 = math.exp %224 : vector<8x32xf32>
    %cst_59 = arith.constant 1.000000e+00 : f32
    %226 = vector.broadcast %cst_59 : f32 to vector<8x32xf32>
    %227 = arith.addf %226, %225 : vector<8x32xf32>
    %228 = arith.divf %226, %227 : vector<8x32xf32>
    %229 = vector.extract_strided_slice %222 {offsets = [0, 32], sizes = [8, 32], strides = [1, 1]} : vector<8x128xf32> to vector<8x32xf32>
    %230 = arith.negf %229 : vector<8x32xf32>
    %231 = math.exp %230 : vector<8x32xf32>
    %cst_60 = arith.constant 1.000000e+00 : f32
    %232 = vector.broadcast %cst_60 : f32 to vector<8x32xf32>
    %233 = arith.addf %232, %231 : vector<8x32xf32>
    %234 = arith.divf %232, %233 : vector<8x32xf32>
    %235 = vector.extract_strided_slice %222 {offsets = [0, 64], sizes = [8, 32], strides = [1, 1]} : vector<8x128xf32> to vector<8x32xf32>
    %236 = math.tanh %235 : vector<8x32xf32>
    %237 = vector.extract_strided_slice %222 {offsets = [0, 96], sizes = [8, 32], strides = [1, 1]} : vector<8x128xf32> to vector<8x32xf32>
    %238 = arith.negf %237 : vector<8x32xf32>
    %239 = math.exp %238 : vector<8x32xf32>
    %cst_61 = arith.constant 1.000000e+00 : f32
    %240 = vector.broadcast %cst_61 : f32 to vector<8x32xf32>
    %241 = arith.addf %240, %239 : vector<8x32xf32>
    %242 = arith.divf %240, %241 : vector<8x32xf32>
    %243 = arith.mulf %234, %212 : vector<8x32xf32>
    %244 = arith.mulf %228, %236 : vector<8x32xf32>
    %245 = arith.addf %243, %244 : vector<8x32xf32>
    %246 = math.tanh %245 : vector<8x32xf32>
    %247 = arith.mulf %242, %246 : vector<8x32xf32>
    %c6 = arith.constant 6 : index
    %c0_62 = arith.constant 0 : index
    %c0_63 = arith.constant 0 : index
    %248 = vector.load %arg19[%c6, %c0_62, %c0_63] : memref<8x8x32xf32, #tpu.memory_space<vmem>>, vector<1x8x32xf32>
    %249 = vector.shape_cast %248 : vector<1x8x32xf32> to vector<8x32xf32>
    %250 = vector.shape_cast %247 : vector<8x32xf32> to vector<1x8x32xf32>
    tpu.vector_store %arg19[%c6, %c0_62, %c0_63], %250 {strides = array<i32>} : memref<8x8x32xf32, #tpu.memory_space<vmem>>, vector<1x8x32xf32>,
    %251 = vector.extract_strided_slice %15 {offsets = [7, 0, 0], sizes = [1, 8, 128], strides = [1, 1, 1]} : vector<8x8x128xf32> to vector<1x8x128xf32>
    %252 = vector.shape_cast %251 : vector<1x8x128xf32> to vector<8x128xf32>
    %253 = arith.truncf %247 : vector<8x32xf32> to vector<8x32xbf16>
    %cst_64 = arith.constant dense<0.000000e+00> : vector<8x128xf32>
    %254 = tpu.matmul %253, %4, %cst_64 {dimension_numbers = #tpu.dot_dimension_numbers<[1], [0], [0], [1], [0, 0, 1, 1], [], []>} : vector<8x32xbf16>, vector<32x128xbf16>, vector<8x128xf32> -> vector<8x128xf32>
    %255 = arith.addf %252, %254 : vector<8x128xf32>
    %256 = vector.extract_strided_slice %255 {offsets = [0, 0], sizes = [8, 32], strides = [1, 1]} : vector<8x128xf32> to vector<8x32xf32>
    %257 = arith.negf %256 : vector<8x32xf32>
    %258 = math.exp %257 : vector<8x32xf32>
    %cst_65 = arith.constant 1.000000e+00 : f32
    %259 = vector.broadcast %cst_65 : f32 to vector<8x32xf32>
    %260 = arith.addf %259, %258 : vector<8x32xf32>
    %261 = arith.divf %259, %260 : vector<8x32xf32>
    %262 = vector.extract_strided_slice %255 {offsets = [0, 32], sizes = [8, 32], strides = [1, 1]} : vector<8x128xf32> to vector<8x32xf32>
    %263 = arith.negf %262 : vector<8x32xf32>
    %264 = math.exp %263 : vector<8x32xf32>
    %cst_66 = arith.constant 1.000000e+00 : f32
    %265 = vector.broadcast %cst_66 : f32 to vector<8x32xf32>
    %266 = arith.addf %265, %264 : vector<8x32xf32>
    %267 = arith.divf %265, %266 : vector<8x32xf32>
    %268 = vector.extract_strided_slice %255 {offsets = [0, 64], sizes = [8, 32], strides = [1, 1]} : vector<8x128xf32> to vector<8x32xf32>
    %269 = math.tanh %268 : vector<8x32xf32>
    %270 = vector.extract_strided_slice %255 {offsets = [0, 96], sizes = [8, 32], strides = [1, 1]} : vector<8x128xf32> to vector<8x32xf32>
    %271 = arith.negf %270 : vector<8x32xf32>
    %272 = math.exp %271 : vector<8x32xf32>
    %cst_67 = arith.constant 1.000000e+00 : f32
    %273 = vector.broadcast %cst_67 : f32 to vector<8x32xf32>
    %274 = arith.addf %273, %272 : vector<8x32xf32>
    %275 = arith.divf %273, %274 : vector<8x32xf32>
    %276 = arith.mulf %267, %245 : vector<8x32xf32>
    %277 = arith.mulf %261, %269 : vector<8x32xf32>
    %278 = arith.addf %276, %277 : vector<8x32xf32>
    %279 = math.tanh %278 : vector<8x32xf32>
    %280 = arith.mulf %275, %279 : vector<8x32xf32>
    %c7 = arith.constant 7 : index
    %c0_68 = arith.constant 0 : index
    %c0_69 = arith.constant 0 : index
    %281 = vector.load %arg19[%c7, %c0_68, %c0_69] : memref<8x8x32xf32, #tpu.memory_space<vmem>>, vector<1x8x32xf32>
    %282 = vector.shape_cast %281 : vector<1x8x32xf32> to vector<8x32xf32>
    %283 = vector.shape_cast %280 : vector<8x32xf32> to vector<1x8x32xf32>
    tpu.vector_store %arg19[%c7, %c0_68, %c0_69], %283 {strides = array<i32>} : memref<8x8x32xf32, #tpu.memory_space<vmem>>, vector<1x8x32xf32>,
    %c0_70 = arith.constant 0 : index
    %c0_71 = arith.constant 0 : index
    %c0_72 = arith.constant 0 : index
    %284 = vector.load %arg19[%c0_70, %c0_71, %c0_72] : memref<8x8x32xf32, #tpu.memory_space<vmem>>, vector<8x8x32xf32>
    %285 = vector.shape_cast %284 : vector<8x8x32xf32> to vector<64x32xf32>
    %286 = arith.truncf %285 : vector<64x32xf32> to vector<64x32xbf16>
    %cst_73 = arith.constant dense<0.000000e+00> : vector<64x128xf32>
    %287 = tpu.matmul %286, %5, %cst_73 {dimension_numbers = #tpu.dot_dimension_numbers<[1], [0], [0], [1], [0, 0, 1, 1], [], []>} : vector<64x32xbf16>, vector<32x128xbf16>, vector<64x128xf32> -> vector<64x128xf32>
    %288 = vector.broadcast %8 : vector<1x128xf32> to vector<64x128xf32>
    %289 = arith.addf %287, %288 : vector<64x128xf32>
    %290 = vector.shape_cast %289 : vector<64x128xf32> to vector<8x8x128xf32>
    %c1_74 = arith.constant 1 : index
    %c0_75 = arith.constant 0 : index
    %c0_76 = arith.constant 0 : index
    %291 = vector.load %arg17[%c1_74, %c0_75, %c0_76] : memref<2x8x32xf32, #tpu.memory_space<vmem>>, vector<1x8x32xf32>
    %292 = vector.shape_cast %291 : vector<1x8x32xf32> to vector<8x32xf32>
    %c1_77 = arith.constant 1 : index
    %c0_78 = arith.constant 0 : index
    %c0_79 = arith.constant 0 : index
    %293 = vector.load %arg18[%c1_77, %c0_78, %c0_79] : memref<2x8x32xf32, #tpu.memory_space<vmem>>, vector<1x8x32xf32>
    %294 = vector.shape_cast %293 : vector<1x8x32xf32> to vector<8x32xf32>
    %295 = vector.extract_strided_slice %290 {offsets = [0, 0, 0], sizes = [1, 8, 128], strides = [1, 1, 1]} : vector<8x8x128xf32> to vector<1x8x128xf32>
    %296 = vector.shape_cast %295 : vector<1x8x128xf32> to vector<8x128xf32>
    %297 = arith.truncf %292 : vector<8x32xf32> to vector<8x32xbf16>
    %cst_80 = arith.constant dense<0.000000e+00> : vector<8x128xf32>
    %298 = tpu.matmul %297, %6, %cst_80 {dimension_numbers = #tpu.dot_dimension_numbers<[1], [0], [0], [1], [0, 0, 1, 1], [], []>} : vector<8x32xbf16>, vector<32x128xbf16>, vector<8x128xf32> -> vector<8x128xf32>
    %299 = arith.addf %296, %298 : vector<8x128xf32>
    %300 = vector.extract_strided_slice %299 {offsets = [0, 0], sizes = [8, 32], strides = [1, 1]} : vector<8x128xf32> to vector<8x32xf32>
    %301 = arith.negf %300 : vector<8x32xf32>
    %302 = math.exp %301 : vector<8x32xf32>
    %cst_81 = arith.constant 1.000000e+00 : f32
    %303 = vector.broadcast %cst_81 : f32 to vector<8x32xf32>
    %304 = arith.addf %303, %302 : vector<8x32xf32>
    %305 = arith.divf %303, %304 : vector<8x32xf32>
    %306 = vector.extract_strided_slice %299 {offsets = [0, 32], sizes = [8, 32], strides = [1, 1]} : vector<8x128xf32> to vector<8x32xf32>
    %307 = arith.negf %306 : vector<8x32xf32>
    %308 = math.exp %307 : vector<8x32xf32>
    %cst_82 = arith.constant 1.000000e+00 : f32
    %309 = vector.broadcast %cst_82 : f32 to vector<8x32xf32>
    %310 = arith.addf %309, %308 : vector<8x32xf32>
    %311 = arith.divf %309, %310 : vector<8x32xf32>
    %312 = vector.extract_strided_slice %299 {offsets = [0, 64], sizes = [8, 32], strides = [1, 1]} : vector<8x128xf32> to vector<8x32xf32>
    %313 = math.tanh %312 : vector<8x32xf32>
    %314 = vector.extract_strided_slice %299 {offsets = [0, 96], sizes = [8, 32], strides = [1, 1]} : vector<8x128xf32> to vector<8x32xf32>
    %315 = arith.negf %314 : vector<8x32xf32>
    %316 = math.exp %315 : vector<8x32xf32>
    %cst_83 = arith.constant 1.000000e+00 : f32
    %317 = vector.broadcast %cst_83 : f32 to vector<8x32xf32>
    %318 = arith.addf %317, %316 : vector<8x32xf32>
    %319 = arith.divf %317, %318 : vector<8x32xf32>
    %320 = arith.mulf %311, %294 : vector<8x32xf32>
    %321 = arith.mulf %305, %313 : vector<8x32xf32>
    %322 = arith.addf %320, %321 : vector<8x32xf32>
    %323 = math.tanh %322 : vector<8x32xf32>
    %324 = arith.mulf %319, %323 : vector<8x32xf32>
    %c0_84 = arith.constant 0 : index
    %c0_85 = arith.constant 0 : index
    %c0_86 = arith.constant 0 : index
    %325 = vector.load %arg10[%c0_84, %c0_85, %c0_86] : memref<8x8x32xf32, #tpu.memory_space<vmem>>, vector<1x8x32xf32>
    %326 = vector.shape_cast %325 : vector<1x8x32xf32> to vector<8x32xf32>
    %327 = vector.shape_cast %324 : vector<8x32xf32> to vector<1x8x32xf32>
    tpu.vector_store %arg10[%c0_84, %c0_85, %c0_86], %327 {strides = array<i32>} : memref<8x8x32xf32, #tpu.memory_space<vmem>>, vector<1x8x32xf32>,
    %328 = vector.extract_strided_slice %290 {offsets = [1, 0, 0], sizes = [1, 8, 128], strides = [1, 1, 1]} : vector<8x8x128xf32> to vector<1x8x128xf32>
    %329 = vector.shape_cast %328 : vector<1x8x128xf32> to vector<8x128xf32>
    %330 = arith.truncf %324 : vector<8x32xf32> to vector<8x32xbf16>
    %cst_87 = arith.constant dense<0.000000e+00> : vector<8x128xf32>
    %331 = tpu.matmul %330, %6, %cst_87 {dimension_numbers = #tpu.dot_dimension_numbers<[1], [0], [0], [1], [0, 0, 1, 1], [], []>} : vector<8x32xbf16>, vector<32x128xbf16>, vector<8x128xf32> -> vector<8x128xf32>
    %332 = arith.addf %329, %331 : vector<8x128xf32>
    %333 = vector.extract_strided_slice %332 {offsets = [0, 0], sizes = [8, 32], strides = [1, 1]} : vector<8x128xf32> to vector<8x32xf32>
    %334 = arith.negf %333 : vector<8x32xf32>
    %335 = math.exp %334 : vector<8x32xf32>
    %cst_88 = arith.constant 1.000000e+00 : f32
    %336 = vector.broadcast %cst_88 : f32 to vector<8x32xf32>
    %337 = arith.addf %336, %335 : vector<8x32xf32>
    %338 = arith.divf %336, %337 : vector<8x32xf32>
    %339 = vector.extract_strided_slice %332 {offsets = [0, 32], sizes = [8, 32], strides = [1, 1]} : vector<8x128xf32> to vector<8x32xf32>
    %340 = arith.negf %339 : vector<8x32xf32>
    %341 = math.exp %340 : vector<8x32xf32>
    %cst_89 = arith.constant 1.000000e+00 : f32
    %342 = vector.broadcast %cst_89 : f32 to vector<8x32xf32>
    %343 = arith.addf %342, %341 : vector<8x32xf32>
    %344 = arith.divf %342, %343 : vector<8x32xf32>
    %345 = vector.extract_strided_slice %332 {offsets = [0, 64], sizes = [8, 32], strides = [1, 1]} : vector<8x128xf32> to vector<8x32xf32>
    %346 = math.tanh %345 : vector<8x32xf32>
    %347 = vector.extract_strided_slice %332 {offsets = [0, 96], sizes = [8, 32], strides = [1, 1]} : vector<8x128xf32> to vector<8x32xf32>
    %348 = arith.negf %347 : vector<8x32xf32>
    %349 = math.exp %348 : vector<8x32xf32>
    %cst_90 = arith.constant 1.000000e+00 : f32
    %350 = vector.broadcast %cst_90 : f32 to vector<8x32xf32>
    %351 = arith.addf %350, %349 : vector<8x32xf32>
    %352 = arith.divf %350, %351 : vector<8x32xf32>
    %353 = arith.mulf %344, %322 : vector<8x32xf32>
    %354 = arith.mulf %338, %346 : vector<8x32xf32>
    %355 = arith.addf %353, %354 : vector<8x32xf32>
    %356 = math.tanh %355 : vector<8x32xf32>
    %357 = arith.mulf %352, %356 : vector<8x32xf32>
    %c1_91 = arith.constant 1 : index
    %c0_92 = arith.constant 0 : index
    %c0_93 = arith.constant 0 : index
    %358 = vector.load %arg10[%c1_91, %c0_92, %c0_93] : memref<8x8x32xf32, #tpu.memory_space<vmem>>, vector<1x8x32xf32>
    %359 = vector.shape_cast %358 : vector<1x8x32xf32> to vector<8x32xf32>
    %360 = vector.shape_cast %357 : vector<8x32xf32> to vector<1x8x32xf32>
    tpu.vector_store %arg10[%c1_91, %c0_92, %c0_93], %360 {strides = array<i32>} : memref<8x8x32xf32, #tpu.memory_space<vmem>>, vector<1x8x32xf32>,
    %361 = vector.extract_strided_slice %290 {offsets = [2, 0, 0], sizes = [1, 8, 128], strides = [1, 1, 1]} : vector<8x8x128xf32> to vector<1x8x128xf32>
    %362 = vector.shape_cast %361 : vector<1x8x128xf32> to vector<8x128xf32>
    %363 = arith.truncf %357 : vector<8x32xf32> to vector<8x32xbf16>
    %cst_94 = arith.constant dense<0.000000e+00> : vector<8x128xf32>
    %364 = tpu.matmul %363, %6, %cst_94 {dimension_numbers = #tpu.dot_dimension_numbers<[1], [0], [0], [1], [0, 0, 1, 1], [], []>} : vector<8x32xbf16>, vector<32x128xbf16>, vector<8x128xf32> -> vector<8x128xf32>
    %365 = arith.addf %362, %364 : vector<8x128xf32>
    %366 = vector.extract_strided_slice %365 {offsets = [0, 0], sizes = [8, 32], strides = [1, 1]} : vector<8x128xf32> to vector<8x32xf32>
    %367 = arith.negf %366 : vector<8x32xf32>
    %368 = math.exp %367 : vector<8x32xf32>
    %cst_95 = arith.constant 1.000000e+00 : f32
    %369 = vector.broadcast %cst_95 : f32 to vector<8x32xf32>
    %370 = arith.addf %369, %368 : vector<8x32xf32>
    %371 = arith.divf %369, %370 : vector<8x32xf32>
    %372 = vector.extract_strided_slice %365 {offsets = [0, 32], sizes = [8, 32], strides = [1, 1]} : vector<8x128xf32> to vector<8x32xf32>
    %373 = arith.negf %372 : vector<8x32xf32>
    %374 = math.exp %373 : vector<8x32xf32>
    %cst_96 = arith.constant 1.000000e+00 : f32
    %375 = vector.broadcast %cst_96 : f32 to vector<8x32xf32>
    %376 = arith.addf %375, %374 : vector<8x32xf32>
    %377 = arith.divf %375, %376 : vector<8x32xf32>
    %378 = vector.extract_strided_slice %365 {offsets = [0, 64], sizes = [8, 32], strides = [1, 1]} : vector<8x128xf32> to vector<8x32xf32>
    %379 = math.tanh %378 : vector<8x32xf32>
    %380 = vector.extract_strided_slice %365 {offsets = [0, 96], sizes = [8, 32], strides = [1, 1]} : vector<8x128xf32> to vector<8x32xf32>
    %381 = arith.negf %380 : vector<8x32xf32>
    %382 = math.exp %381 : vector<8x32xf32>
    %cst_97 = arith.constant 1.000000e+00 : f32
    %383 = vector.broadcast %cst_97 : f32 to vector<8x32xf32>
    %384 = arith.addf %383, %382 : vector<8x32xf32>
    %385 = arith.divf %383, %384 : vector<8x32xf32>
    %386 = arith.mulf %377, %355 : vector<8x32xf32>
    %387 = arith.mulf %371, %379 : vector<8x32xf32>
    %388 = arith.addf %386, %387 : vector<8x32xf32>
    %389 = math.tanh %388 : vector<8x32xf32>
    %390 = arith.mulf %385, %389 : vector<8x32xf32>
    %c2_98 = arith.constant 2 : index
    %c0_99 = arith.constant 0 : index
    %c0_100 = arith.constant 0 : index
    %391 = vector.load %arg10[%c2_98, %c0_99, %c0_100] : memref<8x8x32xf32, #tpu.memory_space<vmem>>, vector<1x8x32xf32>
    %392 = vector.shape_cast %391 : vector<1x8x32xf32> to vector<8x32xf32>
    %393 = vector.shape_cast %390 : vector<8x32xf32> to vector<1x8x32xf32>
    tpu.vector_store %arg10[%c2_98, %c0_99, %c0_100], %393 {strides = array<i32>} : memref<8x8x32xf32, #tpu.memory_space<vmem>>, vector<1x8x32xf32>,
    %394 = vector.extract_strided_slice %290 {offsets = [3, 0, 0], sizes = [1, 8, 128], strides = [1, 1, 1]} : vector<8x8x128xf32> to vector<1x8x128xf32>
    %395 = vector.shape_cast %394 : vector<1x8x128xf32> to vector<8x128xf32>
    %396 = arith.truncf %390 : vector<8x32xf32> to vector<8x32xbf16>
    %cst_101 = arith.constant dense<0.000000e+00> : vector<8x128xf32>
    %397 = tpu.matmul %396, %6, %cst_101 {dimension_numbers = #tpu.dot_dimension_numbers<[1], [0], [0], [1], [0, 0, 1, 1], [], []>} : vector<8x32xbf16>, vector<32x128xbf16>, vector<8x128xf32> -> vector<8x128xf32>
    %398 = arith.addf %395, %397 : vector<8x128xf32>
    %399 = vector.extract_strided_slice %398 {offsets = [0, 0], sizes = [8, 32], strides = [1, 1]} : vector<8x128xf32> to vector<8x32xf32>
    %400 = arith.negf %399 : vector<8x32xf32>
    %401 = math.exp %400 : vector<8x32xf32>
    %cst_102 = arith.constant 1.000000e+00 : f32
    %402 = vector.broadcast %cst_102 : f32 to vector<8x32xf32>
    %403 = arith.addf %402, %401 : vector<8x32xf32>
    %404 = arith.divf %402, %403 : vector<8x32xf32>
    %405 = vector.extract_strided_slice %398 {offsets = [0, 32], sizes = [8, 32], strides = [1, 1]} : vector<8x128xf32> to vector<8x32xf32>
    %406 = arith.negf %405 : vector<8x32xf32>
    %407 = math.exp %406 : vector<8x32xf32>
    %cst_103 = arith.constant 1.000000e+00 : f32
    %408 = vector.broadcast %cst_103 : f32 to vector<8x32xf32>
    %409 = arith.addf %408, %407 : vector<8x32xf32>
    %410 = arith.divf %408, %409 : vector<8x32xf32>
    %411 = vector.extract_strided_slice %398 {offsets = [0, 64], sizes = [8, 32], strides = [1, 1]} : vector<8x128xf32> to vector<8x32xf32>
    %412 = math.tanh %411 : vector<8x32xf32>
    %413 = vector.extract_strided_slice %398 {offsets = [0, 96], sizes = [8, 32], strides = [1, 1]} : vector<8x128xf32> to vector<8x32xf32>
    %414 = arith.negf %413 : vector<8x32xf32>
    %415 = math.exp %414 : vector<8x32xf32>
    %cst_104 = arith.constant 1.000000e+00 : f32
    %416 = vector.broadcast %cst_104 : f32 to vector<8x32xf32>
    %417 = arith.addf %416, %415 : vector<8x32xf32>
    %418 = arith.divf %416, %417 : vector<8x32xf32>
    %419 = arith.mulf %410, %388 : vector<8x32xf32>
    %420 = arith.mulf %404, %412 : vector<8x32xf32>
    %421 = arith.addf %419, %420 : vector<8x32xf32>
    %422 = math.tanh %421 : vector<8x32xf32>
    %423 = arith.mulf %418, %422 : vector<8x32xf32>
    %c3_105 = arith.constant 3 : index
    %c0_106 = arith.constant 0 : index
    %c0_107 = arith.constant 0 : index
    %424 = vector.load %arg10[%c3_105, %c0_106, %c0_107] : memref<8x8x32xf32, #tpu.memory_space<vmem>>, vector<1x8x32xf32>
    %425 = vector.shape_cast %424 : vector<1x8x32xf32> to vector<8x32xf32>
    %426 = vector.shape_cast %423 : vector<8x32xf32> to vector<1x8x32xf32>
    tpu.vector_store %arg10[%c3_105, %c0_106, %c0_107], %426 {strides = array<i32>} : memref<8x8x32xf32, #tpu.memory_space<vmem>>, vector<1x8x32xf32>,
    %427 = vector.extract_strided_slice %290 {offsets = [4, 0, 0], sizes = [1, 8, 128], strides = [1, 1, 1]} : vector<8x8x128xf32> to vector<1x8x128xf32>
    %428 = vector.shape_cast %427 : vector<1x8x128xf32> to vector<8x128xf32>
    %429 = arith.truncf %423 : vector<8x32xf32> to vector<8x32xbf16>
    %cst_108 = arith.constant dense<0.000000e+00> : vector<8x128xf32>
    %430 = tpu.matmul %429, %6, %cst_108 {dimension_numbers = #tpu.dot_dimension_numbers<[1], [0], [0], [1], [0, 0, 1, 1], [], []>} : vector<8x32xbf16>, vector<32x128xbf16>, vector<8x128xf32> -> vector<8x128xf32>
    %431 = arith.addf %428, %430 : vector<8x128xf32>
    %432 = vector.extract_strided_slice %431 {offsets = [0, 0], sizes = [8, 32], strides = [1, 1]} : vector<8x128xf32> to vector<8x32xf32>
    %433 = arith.negf %432 : vector<8x32xf32>
    %434 = math.exp %433 : vector<8x32xf32>
    %cst_109 = arith.constant 1.000000e+00 : f32
    %435 = vector.broadcast %cst_109 : f32 to vector<8x32xf32>
    %436 = arith.addf %435, %434 : vector<8x32xf32>
    %437 = arith.divf %435, %436 : vector<8x32xf32>
    %438 = vector.extract_strided_slice %431 {offsets = [0, 32], sizes = [8, 32], strides = [1, 1]} : vector<8x128xf32> to vector<8x32xf32>
    %439 = arith.negf %438 : vector<8x32xf32>
    %440 = math.exp %439 : vector<8x32xf32>
    %cst_110 = arith.constant 1.000000e+00 : f32
    %441 = vector.broadcast %cst_110 : f32 to vector<8x32xf32>
    %442 = arith.addf %441, %440 : vector<8x32xf32>
    %443 = arith.divf %441, %442 : vector<8x32xf32>
    %444 = vector.extract_strided_slice %431 {offsets = [0, 64], sizes = [8, 32], strides = [1, 1]} : vector<8x128xf32> to vector<8x32xf32>
    %445 = math.tanh %444 : vector<8x32xf32>
    %446 = vector.extract_strided_slice %431 {offsets = [0, 96], sizes = [8, 32], strides = [1, 1]} : vector<8x128xf32> to vector<8x32xf32>
    %447 = arith.negf %446 : vector<8x32xf32>
    %448 = math.exp %447 : vector<8x32xf32>
    %cst_111 = arith.constant 1.000000e+00 : f32
    %449 = vector.broadcast %cst_111 : f32 to vector<8x32xf32>
    %450 = arith.addf %449, %448 : vector<8x32xf32>
    %451 = arith.divf %449, %450 : vector<8x32xf32>
    %452 = arith.mulf %443, %421 : vector<8x32xf32>
    %453 = arith.mulf %437, %445 : vector<8x32xf32>
    %454 = arith.addf %452, %453 : vector<8x32xf32>
    %455 = math.tanh %454 : vector<8x32xf32>
    %456 = arith.mulf %451, %455 : vector<8x32xf32>
    %c4_112 = arith.constant 4 : index
    %c0_113 = arith.constant 0 : index
    %c0_114 = arith.constant 0 : index
    %457 = vector.load %arg10[%c4_112, %c0_113, %c0_114] : memref<8x8x32xf32, #tpu.memory_space<vmem>>, vector<1x8x32xf32>
    %458 = vector.shape_cast %457 : vector<1x8x32xf32> to vector<8x32xf32>
    %459 = vector.shape_cast %456 : vector<8x32xf32> to vector<1x8x32xf32>
    tpu.vector_store %arg10[%c4_112, %c0_113, %c0_114], %459 {strides = array<i32>} : memref<8x8x32xf32, #tpu.memory_space<vmem>>, vector<1x8x32xf32>,
    %460 = vector.extract_strided_slice %290 {offsets = [5, 0, 0], sizes = [1, 8, 128], strides = [1, 1, 1]} : vector<8x8x128xf32> to vector<1x8x128xf32>
    %461 = vector.shape_cast %460 : vector<1x8x128xf32> to vector<8x128xf32>
    %462 = arith.truncf %456 : vector<8x32xf32> to vector<8x32xbf16>
    %cst_115 = arith.constant dense<0.000000e+00> : vector<8x128xf32>
    %463 = tpu.matmul %462, %6, %cst_115 {dimension_numbers = #tpu.dot_dimension_numbers<[1], [0], [0], [1], [0, 0, 1, 1], [], []>} : vector<8x32xbf16>, vector<32x128xbf16>, vector<8x128xf32> -> vector<8x128xf32>
    %464 = arith.addf %461, %463 : vector<8x128xf32>
    %465 = vector.extract_strided_slice %464 {offsets = [0, 0], sizes = [8, 32], strides = [1, 1]} : vector<8x128xf32> to vector<8x32xf32>
    %466 = arith.negf %465 : vector<8x32xf32>
    %467 = math.exp %466 : vector<8x32xf32>
    %cst_116 = arith.constant 1.000000e+00 : f32
    %468 = vector.broadcast %cst_116 : f32 to vector<8x32xf32>
    %469 = arith.addf %468, %467 : vector<8x32xf32>
    %470 = arith.divf %468, %469 : vector<8x32xf32>
    %471 = vector.extract_strided_slice %464 {offsets = [0, 32], sizes = [8, 32], strides = [1, 1]} : vector<8x128xf32> to vector<8x32xf32>
    %472 = arith.negf %471 : vector<8x32xf32>
    %473 = math.exp %472 : vector<8x32xf32>
    %cst_117 = arith.constant 1.000000e+00 : f32
    %474 = vector.broadcast %cst_117 : f32 to vector<8x32xf32>
    %475 = arith.addf %474, %473 : vector<8x32xf32>
    %476 = arith.divf %474, %475 : vector<8x32xf32>
    %477 = vector.extract_strided_slice %464 {offsets = [0, 64], sizes = [8, 32], strides = [1, 1]} : vector<8x128xf32> to vector<8x32xf32>
    %478 = math.tanh %477 : vector<8x32xf32>
    %479 = vector.extract_strided_slice %464 {offsets = [0, 96], sizes = [8, 32], strides = [1, 1]} : vector<8x128xf32> to vector<8x32xf32>
    %480 = arith.negf %479 : vector<8x32xf32>
    %481 = math.exp %480 : vector<8x32xf32>
    %cst_118 = arith.constant 1.000000e+00 : f32
    %482 = vector.broadcast %cst_118 : f32 to vector<8x32xf32>
    %483 = arith.addf %482, %481 : vector<8x32xf32>
    %484 = arith.divf %482, %483 : vector<8x32xf32>
    %485 = arith.mulf %476, %454 : vector<8x32xf32>
    %486 = arith.mulf %470, %478 : vector<8x32xf32>
    %487 = arith.addf %485, %486 : vector<8x32xf32>
    %488 = math.tanh %487 : vector<8x32xf32>
    %489 = arith.mulf %484, %488 : vector<8x32xf32>
    %c5_119 = arith.constant 5 : index
    %c0_120 = arith.constant 0 : index
    %c0_121 = arith.constant 0 : index
    %490 = vector.load %arg10[%c5_119, %c0_120, %c0_121] : memref<8x8x32xf32, #tpu.memory_space<vmem>>, vector<1x8x32xf32>
    %491 = vector.shape_cast %490 : vector<1x8x32xf32> to vector<8x32xf32>
    %492 = vector.shape_cast %489 : vector<8x32xf32> to vector<1x8x32xf32>
    tpu.vector_store %arg10[%c5_119, %c0_120, %c0_121], %492 {strides = array<i32>} : memref<8x8x32xf32, #tpu.memory_space<vmem>>, vector<1x8x32xf32>,
    %493 = vector.extract_strided_slice %290 {offsets = [6, 0, 0], sizes = [1, 8, 128], strides = [1, 1, 1]} : vector<8x8x128xf32> to vector<1x8x128xf32>
    %494 = vector.shape_cast %493 : vector<1x8x128xf32> to vector<8x128xf32>
    %495 = arith.truncf %489 : vector<8x32xf32> to vector<8x32xbf16>
    %cst_122 = arith.constant dense<0.000000e+00> : vector<8x128xf32>
    %496 = tpu.matmul %495, %6, %cst_122 {dimension_numbers = #tpu.dot_dimension_numbers<[1], [0], [0], [1], [0, 0, 1, 1], [], []>} : vector<8x32xbf16>, vector<32x128xbf16>, vector<8x128xf32> -> vector<8x128xf32>
    %497 = arith.addf %494, %496 : vector<8x128xf32>
    %498 = vector.extract_strided_slice %497 {offsets = [0, 0], sizes = [8, 32], strides = [1, 1]} : vector<8x128xf32> to vector<8x32xf32>
    %499 = arith.negf %498 : vector<8x32xf32>
    %500 = math.exp %499 : vector<8x32xf32>
    %cst_123 = arith.constant 1.000000e+00 : f32
    %501 = vector.broadcast %cst_123 : f32 to vector<8x32xf32>
    %502 = arith.addf %501, %500 : vector<8x32xf32>
    %503 = arith.divf %501, %502 : vector<8x32xf32>
    %504 = vector.extract_strided_slice %497 {offsets = [0, 32], sizes = [8, 32], strides = [1, 1]} : vector<8x128xf32> to vector<8x32xf32>
    %505 = arith.negf %504 : vector<8x32xf32>
    %506 = math.exp %505 : vector<8x32xf32>
    %cst_124 = arith.constant 1.000000e+00 : f32
    %507 = vector.broadcast %cst_124 : f32 to vector<8x32xf32>
    %508 = arith.addf %507, %506 : vector<8x32xf32>
    %509 = arith.divf %507, %508 : vector<8x32xf32>
    %510 = vector.extract_strided_slice %497 {offsets = [0, 64], sizes = [8, 32], strides = [1, 1]} : vector<8x128xf32> to vector<8x32xf32>
    %511 = math.tanh %510 : vector<8x32xf32>
    %512 = vector.extract_strided_slice %497 {offsets = [0, 96], sizes = [8, 32], strides = [1, 1]} : vector<8x128xf32> to vector<8x32xf32>
    %513 = arith.negf %512 : vector<8x32xf32>
    %514 = math.exp %513 : vector<8x32xf32>
    %cst_125 = arith.constant 1.000000e+00 : f32
    %515 = vector.broadcast %cst_125 : f32 to vector<8x32xf32>
    %516 = arith.addf %515, %514 : vector<8x32xf32>
    %517 = arith.divf %515, %516 : vector<8x32xf32>
    %518 = arith.mulf %509, %487 : vector<8x32xf32>
    %519 = arith.mulf %503, %511 : vector<8x32xf32>
    %520 = arith.addf %518, %519 : vector<8x32xf32>
    %521 = math.tanh %520 : vector<8x32xf32>
    %522 = arith.mulf %517, %521 : vector<8x32xf32>
    %c6_126 = arith.constant 6 : index
    %c0_127 = arith.constant 0 : index
    %c0_128 = arith.constant 0 : index
    %523 = vector.load %arg10[%c6_126, %c0_127, %c0_128] : memref<8x8x32xf32, #tpu.memory_space<vmem>>, vector<1x8x32xf32>
    %524 = vector.shape_cast %523 : vector<1x8x32xf32> to vector<8x32xf32>
    %525 = vector.shape_cast %522 : vector<8x32xf32> to vector<1x8x32xf32>
    tpu.vector_store %arg10[%c6_126, %c0_127, %c0_128], %525 {strides = array<i32>} : memref<8x8x32xf32, #tpu.memory_space<vmem>>, vector<1x8x32xf32>,
    %526 = vector.extract_strided_slice %290 {offsets = [7, 0, 0], sizes = [1, 8, 128], strides = [1, 1, 1]} : vector<8x8x128xf32> to vector<1x8x128xf32>
    %527 = vector.shape_cast %526 : vector<1x8x128xf32> to vector<8x128xf32>
    %528 = arith.truncf %522 : vector<8x32xf32> to vector<8x32xbf16>
    %cst_129 = arith.constant dense<0.000000e+00> : vector<8x128xf32>
    %529 = tpu.matmul %528, %6, %cst_129 {dimension_numbers = #tpu.dot_dimension_numbers<[1], [0], [0], [1], [0, 0, 1, 1], [], []>} : vector<8x32xbf16>, vector<32x128xbf16>, vector<8x128xf32> -> vector<8x128xf32>
    %530 = arith.addf %527, %529 : vector<8x128xf32>
    %531 = vector.extract_strided_slice %530 {offsets = [0, 0], sizes = [8, 32], strides = [1, 1]} : vector<8x128xf32> to vector<8x32xf32>
    %532 = arith.negf %531 : vector<8x32xf32>
    %533 = math.exp %532 : vector<8x32xf32>
    %cst_130 = arith.constant 1.000000e+00 : f32
    %534 = vector.broadcast %cst_130 : f32 to vector<8x32xf32>
    %535 = arith.addf %534, %533 : vector<8x32xf32>
    %536 = arith.divf %534, %535 : vector<8x32xf32>
    %537 = vector.extract_strided_slice %530 {offsets = [0, 32], sizes = [8, 32], strides = [1, 1]} : vector<8x128xf32> to vector<8x32xf32>
    %538 = arith.negf %537 : vector<8x32xf32>
    %539 = math.exp %538 : vector<8x32xf32>
    %cst_131 = arith.constant 1.000000e+00 : f32
    %540 = vector.broadcast %cst_131 : f32 to vector<8x32xf32>
    %541 = arith.addf %540, %539 : vector<8x32xf32>
    %542 = arith.divf %540, %541 : vector<8x32xf32>
    %543 = vector.extract_strided_slice %530 {offsets = [0, 64], sizes = [8, 32], strides = [1, 1]} : vector<8x128xf32> to vector<8x32xf32>
    %544 = math.tanh %543 : vector<8x32xf32>
    %545 = vector.extract_strided_slice %530 {offsets = [0, 96], sizes = [8, 32], strides = [1, 1]} : vector<8x128xf32> to vector<8x32xf32>
    %546 = arith.negf %545 : vector<8x32xf32>
    %547 = math.exp %546 : vector<8x32xf32>
    %cst_132 = arith.constant 1.000000e+00 : f32
    %548 = vector.broadcast %cst_132 : f32 to vector<8x32xf32>
    %549 = arith.addf %548, %547 : vector<8x32xf32>
    %550 = arith.divf %548, %549 : vector<8x32xf32>
    %551 = arith.mulf %542, %520 : vector<8x32xf32>
    %552 = arith.mulf %536, %544 : vector<8x32xf32>
    %553 = arith.addf %551, %552 : vector<8x32xf32>
    %554 = math.tanh %553 : vector<8x32xf32>
    %555 = arith.mulf %550, %554 : vector<8x32xf32>
    %c7_133 = arith.constant 7 : index
    %c0_134 = arith.constant 0 : index
    %c0_135 = arith.constant 0 : index
    %556 = vector.load %arg10[%c7_133, %c0_134, %c0_135] : memref<8x8x32xf32, #tpu.memory_space<vmem>>, vector<1x8x32xf32>
    %557 = vector.shape_cast %556 : vector<1x8x32xf32> to vector<8x32xf32>
    %558 = vector.shape_cast %555 : vector<8x32xf32> to vector<1x8x32xf32>
    tpu.vector_store %arg10[%c7_133, %c0_134, %c0_135], %558 {strides = array<i32>} : memref<8x8x32xf32, #tpu.memory_space<vmem>>, vector<1x8x32xf32>,
    %c0_136 = arith.constant 0 : index
    %c0_137 = arith.constant 0 : index
    %c0_138 = arith.constant 0 : index
    %559 = vector.load %arg17[%c0_136, %c0_137, %c0_138] : memref<2x8x32xf32, #tpu.memory_space<vmem>>, vector<1x8x32xf32>
    %560 = vector.shape_cast %559 : vector<1x8x32xf32> to vector<8x32xf32>
    %561 = vector.shape_cast %280 : vector<8x32xf32> to vector<1x8x32xf32>
    tpu.vector_store %arg17[%c0_136, %c0_137, %c0_138], %561 {strides = array<i32>} : memref<2x8x32xf32, #tpu.memory_space<vmem>>, vector<1x8x32xf32>,
    %c1_139 = arith.constant 1 : index
    %c0_140 = arith.constant 0 : index
    %c0_141 = arith.constant 0 : index
    %562 = vector.load %arg17[%c1_139, %c0_140, %c0_141] : memref<2x8x32xf32, #tpu.memory_space<vmem>>, vector<1x8x32xf32>
    %563 = vector.shape_cast %562 : vector<1x8x32xf32> to vector<8x32xf32>
    %564 = vector.shape_cast %555 : vector<8x32xf32> to vector<1x8x32xf32>
    tpu.vector_store %arg17[%c1_139, %c0_140, %c0_141], %564 {strides = array<i32>} : memref<2x8x32xf32, #tpu.memory_space<vmem>>, vector<1x8x32xf32>,
    %c0_142 = arith.constant 0 : index
    %c0_143 = arith.constant 0 : index
    %c0_144 = arith.constant 0 : index
    %565 = vector.load %arg18[%c0_142, %c0_143, %c0_144] : memref<2x8x32xf32, #tpu.memory_space<vmem>>, vector<1x8x32xf32>
    %566 = vector.shape_cast %565 : vector<1x8x32xf32> to vector<8x32xf32>
    %567 = vector.shape_cast %278 : vector<8x32xf32> to vector<1x8x32xf32>
    tpu.vector_store %arg18[%c0_142, %c0_143, %c0_144], %567 {strides = array<i32>} : memref<2x8x32xf32, #tpu.memory_space<vmem>>, vector<1x8x32xf32>,
    %c1_145 = arith.constant 1 : index
    %c0_146 = arith.constant 0 : index
    %c0_147 = arith.constant 0 : index
    %568 = vector.load %arg18[%c1_145, %c0_146, %c0_147] : memref<2x8x32xf32, #tpu.memory_space<vmem>>, vector<1x8x32xf32>
    %569 = vector.shape_cast %568 : vector<1x8x32xf32> to vector<8x32xf32>
    %570 = vector.shape_cast %553 : vector<8x32xf32> to vector<1x8x32xf32>
    tpu.vector_store %arg18[%c1_145, %c0_146, %c0_147], %570 {strides = array<i32>} : memref<2x8x32xf32, #tpu.memory_space<vmem>>, vector<1x8x32xf32>,
    %c0_i32_148 = arith.constant 0 : i32
    %571 = arith.cmpi eq, %arg0, %c0_i32_148 : i32
    %572 = arith.extui %571 : i1 to i32
    %c0_i32_149 = arith.constant 0 : i32
    %573 = arith.cmpi ne, %572, %c0_i32_149 : i32
    scf.if %573 {
      %c0_150 = arith.constant 0 : index
      %c0_151 = arith.constant 0 : index
      %c0_152 = arith.constant 0 : index
      %574 = vector.load %arg11[%c0_150, %c0_151, %c0_152] : memref<2x8x32xf32, #tpu.memory_space<vmem>>, vector<1x8x32xf32>
      %575 = vector.shape_cast %574 : vector<1x8x32xf32> to vector<8x32xf32>
      %576 = vector.shape_cast %280 : vector<8x32xf32> to vector<1x8x32xf32>
      tpu.vector_store %arg11[%c0_150, %c0_151, %c0_152], %576 {strides = array<i32>} : memref<2x8x32xf32, #tpu.memory_space<vmem>>, vector<1x8x32xf32>,
      %c1_153 = arith.constant 1 : index
      %c0_154 = arith.constant 0 : index
      %c0_155 = arith.constant 0 : index
      %577 = vector.load %arg11[%c1_153, %c0_154, %c0_155] : memref<2x8x32xf32, #tpu.memory_space<vmem>>, vector<1x8x32xf32>
      %578 = vector.shape_cast %577 : vector<1x8x32xf32> to vector<8x32xf32>
      %579 = vector.shape_cast %555 : vector<8x32xf32> to vector<1x8x32xf32>
      tpu.vector_store %arg11[%c1_153, %c0_154, %c0_155], %579 {strides = array<i32>} : memref<2x8x32xf32, #tpu.memory_space<vmem>>, vector<1x8x32xf32>,
      %c0_156 = arith.constant 0 : index
      %c0_157 = arith.constant 0 : index
      %c0_158 = arith.constant 0 : index
      %580 = vector.load %arg12[%c0_156, %c0_157, %c0_158] : memref<2x8x32xf32, #tpu.memory_space<vmem>>, vector<1x8x32xf32>
      %581 = vector.shape_cast %580 : vector<1x8x32xf32> to vector<8x32xf32>
      %582 = vector.shape_cast %278 : vector<8x32xf32> to vector<1x8x32xf32>
      tpu.vector_store %arg12[%c0_156, %c0_157, %c0_158], %582 {strides = array<i32>} : memref<2x8x32xf32, #tpu.memory_space<vmem>>, vector<1x8x32xf32>,
      %c1_159 = arith.constant 1 : index
      %c0_160 = arith.constant 0 : index
      %c0_161 = arith.constant 0 : index
      %583 = vector.load %arg12[%c1_159, %c0_160, %c0_161] : memref<2x8x32xf32, #tpu.memory_space<vmem>>, vector<1x8x32xf32>
      %584 = vector.shape_cast %583 : vector<1x8x32xf32> to vector<8x32xf32>
      %585 = vector.shape_cast %553 : vector<8x32xf32> to vector<1x8x32xf32>
      tpu.vector_store %arg12[%c1_159, %c0_160, %c0_161], %585 {strides = array<i32>} : memref<2x8x32xf32, #tpu.memory_space<vmem>>, vector<1x8x32xf32>,
    } else {
    }
    return
  }
  func.func @transform_0(%arg0: i32) -> (i32, i32, i32) {
    %c0_i32 = arith.constant 0 : i32
    %c0_i32_0 = arith.constant 0 : i32
    %c0_i32_1 = arith.constant 0 : i32
    return %arg0, %c0_i32, %c0_i32_0 : i32, i32, i32
  }
  func.func @transform_1(%arg0: i32) -> (i32, i32, i32) {
    %c0_i32 = arith.constant 0 : i32
    %c0_i32_0 = arith.constant 0 : i32
    %c0_i32_1 = arith.constant 0 : i32
    %c0_i32_2 = arith.constant 0 : i32
    return %c0_i32, %c0_i32_0, %c0_i32_1 : i32, i32, i32
  }
  func.func @transform_2(%arg0: i32) -> (i32, i32, i32) {
    %c0_i32 = arith.constant 0 : i32
    %c0_i32_0 = arith.constant 0 : i32
    %c0_i32_1 = arith.constant 0 : i32
    %c0_i32_2 = arith.constant 0 : i32
    return %c0_i32, %c0_i32_0, %c0_i32_1 : i32, i32, i32
  }
  func.func @transform_5(%arg0: i32) -> (i32, i32) {
    %c0_i32 = arith.constant 0 : i32
    %c0_i32_0 = arith.constant 0 : i32
    %c0_i32_1 = arith.constant 0 : i32
    return %c0_i32, %c0_i32_0 : i32, i32
  }
  func.func @transform_8(%arg0: i32) -> (i32, i32) {
    %c0_i32 = arith.constant 0 : i32
    %c0_i32_0 = arith.constant 0 : i32
    %c0_i32_1 = arith.constant 0 : i32
    return %c0_i32, %c0_i32_0 : i32, i32
  }
  func.func @transform_9(%arg0: i32) -> (i32, i32, i32) {
    %c0_i32 = arith.constant 0 : i32
    %c0_i32_0 = arith.constant 0 : i32
    %c0_i32_1 = arith.constant 0 : i32
    return %arg0, %c0_i32, %c0_i32_0 : i32, i32, i32
  }
  func.func @transform_10(%arg0: i32) -> (i32, i32, i32) {
    %c0_i32 = arith.constant 0 : i32
    %c0_i32_0 = arith.constant 0 : i32
    %c0_i32_1 = arith.constant 0 : i32
    %c0_i32_2 = arith.constant 0 : i32
    return %c0_i32, %c0_i32_0, %c0_i32_1 : i32, i32, i32
  }
  func.func @transform_11(%arg0: i32) -> (i32, i32, i32) {
    %c0_i32 = arith.constant 0 : i32
    %c0_i32_0 = arith.constant 0 : i32
    %c0_i32_1 = arith.constant 0 : i32
    %c0_i32_2 = arith.constant 0 : i32
    return %c0_i32, %c0_i32_0, %c0_i32_1 : i32, i32, i32
  }
}

</mosaic_0001>

<bundles_post_ra>
// kernel: rnn_model_forward.3
= control target key start
LH: loop header
LB: loop body
LE: loop exit
PB: predicated region body
PF: predicated region fallthrough
CT: control target
= control target key end

     0   :  { %8 = vsyncpa [#allocation3], 0  ;;  %s579_s0 = inlined_call_operand.vmem [shape: f32[16,32], index: 0, kind: input, shape index: {}]   ;;  %s580_s1 = inlined_call_operand.vmem [shape: bf16[32,64], index: 1, kind: input, shape index: {}]   ;;  %s581_s2 = inlined_call_operand.vmem [shape: f32[1,64], index: 2, kind: input, shape index: {}]   ;;  %s582_s3 = inlined_call_operand.hbm [shape: f32[16,64], index: 3, kind: output, shape index: {}]  }
   0x1   :  { %10 = vsyncpa [#allocation3 + $0x1], 0  ;;  %s480_s12 = smov 0   ;;  %s482_s13 = smov 0  }
   0x2   :  { %s484_s14 = smov 0   ;;  %s486_s15 = smov 0  }
   0x3 LB: > { %s501_s16 = sadd.s32 4294967295, %s455_s15   ;;  %s323_s17 = sadd.s32 4294967294, %s455_s15   ;;  %s455_s15 = sphi %s486_s15, %s588_s15   ;;  %s451_s14 = sphi %s484_s14, %s587_s14   ;;  %s447_s13 = sphi %s482_s13, %s586_s13   ;;  %s443_s12 = sphi %s480_s12, %s585_s12  }
   0x4   : > { %s505_s18 = sadd.s32 1, %s455_s15   ;;  %s91_s19 = sadd.s32 1, %s451_s14 }
   0x5   : > { %s88_s20 = ssub.s32 %s455_s15, %s505_s18  ;;  %p101_p0 = scmp.ne.s32.totalorder %s451_s14, %s447_s13 }
   0x6   : > { %p89_p1 = scmp.eq.s32.totalorder %s88_s20, 0  ;;  %p102_p2 = scmp.eq.s32.totalorder %s501_s16, 1 }
   0x7   : > { %p107_p3 = scmp.ne.s32.totalorder %s447_s13, %s443_s12  ;;  %p108_p4 = scmp.eq.s32.totalorder %s323_s17, 1 }
   0x8   : > { %s516_s21 = scalar_select %p89_p1, %s451_s14, %s91_s19  }
   0x9   : > { %p518_p5 = por %p102_p2, %p101_p0  ;;  %p522_p6 = por %p108_p4, %p107_p3 }
   0xa   : > { %p326_p7 = scmp.ge.s32.totalorder %s455_s15, 1  ;;  %p139_p8 = scmp.lt.s32.totalorder %s455_s15, 3 }
   0xc   : > { %p140_p9 = pnand %p326_p7, %p139_p8 }
   0xd   : > { %p162_p10 = scmp.lt.s32.totalorder (!%p140_p9), %s501_s16, 1  ;;  %s159_s8 = sand.u32 (!%p140_p9), 1, %s447_s13  }
   0xe   : > { %143 = sbr.rel (%p140_p9) target bundleno = 550 (0x226), region = 32  ;;  %s327_s9 = sshll.u32 (!%p140_p9), %s159_s8, 3 }
   0xf   : > { %s334_s10 = sshll.u32 (!%p140_p9), %s501_s16, 7  ;;  %s161_s11 = scalar_lea.vmem (!%p140_p9), [#allocation2], %s327_s9 }
  0x10   : > { %s264_s17 = sshll.u32 (!%p140_p9), %s161_s11, 4  ;;  %s262_s24 = scalar_lea.hbm (!%p140_p9), %s582_s3, %s334_s10  ;;  %s265_s17 = int_to_ptr.vmem [resolvable:$true] %s264_s17 }
  0x11   : > { %s251_s25 = scalar_lea.sflag (!%p140_p9), [#allocation3], %s159_s8  ;;  %s395_s26 = scalar_lea.vmem (!%p140_p9), %s265_s17, 128 }
  0x12   : > { %p396_p11 = scmp.ne.s32.totalorder (!%p140_p9), %s265_s17, %s395_s26  ;;  %s459_s27 = smov (!%p140_p9), [#allocation2]  }
  0x13   : > { %v389_v0 = vld [vmem:[%s580_s1 + $0x8] sm:$0xff]   ;;  %v457_v1 = vmov 0.0   ;;  %v390_v2 = vld [vmem:[%s580_s1] sm:$0xff]   ;;  %vm458_vm0 = vmmov 0   ;;  %s163_s28 = scalar_select %p162_p10, %s501_s16, 1  ;;  %vm192_vm1 = vcmask 261120  }
  0x14   : > { %340 = vmatprep.subr.bf16.mxu0 %v457_v1  ;;  %344 = vmatprep.mubr.msk.bf16.mxu0 %vm458_vm0, %v457_v1  ;;  %v329_v5 = vld [vmem:[%s581_s2] ss:$0 sm:$0xff]  ;;  %vm236_vm2 = vcmask 523264   ;;  %p397_p12 = pnand %p396_p11, %p518_p5 }
  0x15   : > { %341 = vmatpush3.bf16.msra.mxu0 %v389_v0  ;;  %s328_s29 = sshll.u32 %s163_s28, 3  ;;  %s399_s28 = sshll.u32 %s459_s27, 4  ;;  %s400_s28 = int_to_ptr.vmem [resolvable:$false] %s399_s28 }
  0x16   : > { %342 = vmatprep.subr.bf16.mxu0 %v457_v1  ;;  %s165_s5 = scalar_lea.vmem %s579_s0, %s328_s29  ;;  %p398_p13 = pneg %p397_p12 }
  0x17   : > { %v167_v3 = vld [vmem:[%s165_s5] sm:$0xff]  ;;  %s401_s16 = scalar_lea.vmem %s400_s28, 256  ;;  %p402_p0 = scmp.lt.s32.totalorder %s265_s17, %s400_s28 }
  0x18   : > { %v168_v4 = vpack.c.bf16 %v167_v3, %v167_v3  ;;  %p403_p1 = scmp.lt.s32.totalorder %s401_s16, %s395_s26 }
  0x19   : > { %343 = vmatpush3.bf16.msra.mxu0 %v390_v2 }
  0x1a   : > { %p404_p2 = por %p403_p1, %p402_p0 }
  0x1c   : > { %345 = vmatmul.mubr.msk.bf16.vlgmr.msra.gmra.mxu0 %vm192_vm1, %v168_v4  ;;  %p405_p3 = pnand %p404_p2, %p398_p13 }
  0xdc   : > { %v230_v6 = vpop.f32.mrf.mxu0 }
  0xdd   : > { %v231_v7 = vadd.f32 %v329_v5, %v230_v6 }
  0xde   : > { %v346_v8 = vpop.f32.mrf.mxu0 }
  0xdf   : > { %v237_v9 = vsel %vm236_vm2, %v231_v7, -inf }
  0xe0   : > { %238 = vmax.xlane.f32.xlu0 %v237_v9  ;;  %v233_v10 = vpop.f32.mrf.mxu0 }
  0xe2   : > { %v347_v11 = vpop.f32.mrf.mxu0 }
 0x169   : > { %v239_v12 = vpop.xlane.xlu0 %238 }
 0x16a   : > { %v240_v13 = vsub.f32 %v231_v7, %v239_v12 }
 0x16c   : > { %v241_v14 = vmul.f32 1.442695, %v240_v13 }
 0x16e   : > { %391 = vpow2.f32 %v241_v14 }
 0x17b   : > { %v392_v15 = vpop.eup %391 }
 0x17c   : > { %v243_v16 = vsel %vm236_vm2, %v392_v15, 0.0 }
 0x17d   : > { %244 = vadd.xlane.f32.xlu0 %v243_v16 }
 0x206   : > { %v245_v17 = vpop.xlane.xlu0 %244 }
 0x207   : > { %393 = vlog2.f32 %v245_v17 }
 0x214   : > { %v394_v18 = vpop.eup %393 }
 0x215   : > { %v247_v19 = vmul.f32 0.6931472, %v394_v18 }
 0x217   : > { %v248_v20 = vsub.f32 %v240_v13, %v247_v19 }
 0x219   : > { %249 = vst.msk [vmem:[%s161_s11] sm:$0xff] %vm236_vm2, %v248_v20 }
 0x21a   : > { %408 = shalt.err (!%p405_p3)
}
 0x21b   : > { %s409_s29 = scalar_lea.hbm %s262_s24, 128  ;;  %s413_s5 = scalar_lea.hbm %s582_s3, 256 }
 0x21c   : > { %p410_p4 = scmp.ne.s32.totalorder %s262_s24, %s409_s29  ;;  %p414_p9 = scmp.lt.s32.totalorder %s262_s24, %s582_s3 }
 0x21d   : > { %p415_p10 = scmp.lt.s32.totalorder %s413_s5, %s409_s29 }
 0x21e   : > { %p411_p7 = pnand %p410_p4, %p518_p5 }
 0x21f   : > { %p416_p11 = por %p415_p10, %p414_p9 }
 0x220   : > { %p412_p8 = pneg %p411_p7 }
 0x222   : > { %p417_p12 = pnand %p416_p11, %p412_p8 }
 0x224   : > { %420 = shalt.err (!%p417_p12)
}
 0x225   : > { %348 = dma.vmem_to_hbm [thread:$0]  (%p518_p5), %s265_s17, 128, %s262_s24, %s251_s25  }
 0x226 PF: > { %p354_p13 = scmp.ge.s32.totalorder %s455_s15, 2  ;;  %s276_s8 = sand.u32 1, %s443_s12  }
 0x227   : > { %s277_s9 = scalar_lea.sflag [#allocation3], %s276_s8 }
 0x228   : > { %p351_p0 = pnand %p354_p13, %p522_p6 }
 0x22a   : > { %p352_p1 = pneg %p351_p0 }
 0x22c   : > { %438 = dma.done.wait (%p352_p1), %s277_s9, 128  }
 0x22d   : > { %440 = vsyncadd (%p352_p1), %s277_s9, 4294967168  ;;  %p13_p2 = scmp.ge.s32.totalorder %s505_s18, 4   ;;  %s585_s12 = smov %s447_s13 }
 0x22e   : > { %s586_s13 = smov %s451_s14  ;;  %s587_s14 = smov %s516_s21 }
 0x22f   : > { %s588_s15 = smov %s505_s18  ;;  %15 = sbr.rel (!%p13_p2) target bundleno = 3 (0x3), region = 67 }
 0x234   :  { %282 = vsyncpa [#allocation3], 1 }
 0x235   :  { %284 = vsyncpa [#allocation3 + $0x1], 1 }

// kernel: rnn_model_forward.2
= control target key start
LH: loop header
LB: loop body
LE: loop exit
PB: predicated region body
PF: predicated region fallthrough
CT: control target
= control target key end

     0   :  { %s2793_s0 = inlined_call_operand.vmem [shape: f32[8,8,32], index: 0, kind: input, shape index: {}]   ;;  %s2794_s1 = inlined_call_operand.vmem [shape: f32[2,8,32], index: 1, kind: input, shape index: {}]   ;;  %s2795_s2 = inlined_call_operand.vmem [shape: f32[2,8,32], index: 2, kind: input, shape index: {}]   ;;  %s2796_s3 = inlined_call_operand.vmem [shape: bf16[32,128], index: 3, kind: input, shape index: {}]   ;;  %s2797_s4 = inlined_call_operand.vmem [shape: bf16[32,128], index: 4, kind: input, shape index: {}]   ;;  %s2798_s5 = inlined_call_operand.vmem [shape: f32[1,128], index: 5, kind: input, shape index: {}]   ;;  %s2799_s6 = inlined_call_operand.vmem [shape: bf16[32,128], index: 6, kind: input, shape index: {}]   ;;  %s2800_s7 = inlined_call_operand.vmem [shape: bf16[32,128], index: 7, kind: input, shape index: {}]   ;;  %s2801_s8 = inlined_call_operand.vmem [shape: f32[1,128], index: 8, kind: input, shape index: {}]   ;;  %s2802_s9 = inlined_call_operand.vmem [shape: f32[8,8,32], index: 9, kind: output, shape index: {0}]   ;;  %s2803_s10 = inlined_call_operand.vmem [shape: f32[2,8,32], index: 10, kind: output, shape index: {1}]   ;;  %s2804_s11 = inlined_call_operand.vmem [shape: f32[2,8,32], index: 11, kind: output, shape index: {2}]  }
   0x1   :  { %v65_v0 = vld [vmem:[%s2796_s3] sm:$0xff]  ;;  %v67_v1 = vld [vmem:[%s2796_s3 + $0x8] sm:$0xff] }
   0x2   :  { %66 = vst [vmem:[#allocation2] sm:$0xff] %v65_v0  ;;  %68 = vst [vmem:[#allocation2 + $0x8] sm:$0xff] %v67_v1 }
   0x3   :  { %76 = vsyncadd [#allocation9], 256  ;;  %v111_v2 = vld [vmem:[%s2797_s4] sm:$0xff]  ;;  %v113_v3 = vld [vmem:[%s2797_s4 + $0x8] sm:$0xff] }
   0x4   :  { %112 = vst [vmem:[#allocation3] sm:$0xff] %v111_v2  ;;  %114 = vst [vmem:[#allocation3 + $0x8] sm:$0xff] %v113_v3 }
   0x5   :  { %122 = vsyncadd [#allocation9 + $0x1], 256  ;;  %v157_v4 = vld [vmem:[%s2799_s6] sm:$0xff]  ;;  %v159_v5 = vld [vmem:[%s2799_s6 + $0x8] sm:$0xff] }
   0x6   :  { %158 = vst [vmem:[#allocation4] sm:$0xff] %v157_v4  ;;  %160 = vst [vmem:[#allocation4 + $0x8] sm:$0xff] %v159_v5 }
   0x7   :  { %168 = vsyncadd [#allocation9 + $0x2], 256  ;;  %v203_v6 = vld [vmem:[%s2800_s7] sm:$0xff]  ;;  %v205_v7 = vld [vmem:[%s2800_s7 + $0x8] sm:$0xff] }
   0x8   :  { %204 = vst [vmem:[#allocation5] sm:$0xff] %v203_v6  ;;  %206 = vst [vmem:[#allocation5 + $0x8] sm:$0xff] %v205_v7 }
   0x9   :  { %214 = vsyncadd [#allocation9 + $0x3], 256 }
   0xa   :  { %2253 = dma.done.wait [#allocation9], 256 }
   0xb   :  { %2254 = vsyncadd [#allocation9], 4294967040 }
   0xc   :  { %2255 = dma.done.wait [#allocation9 + $0x1], 256 }
   0xd   :  { %2256 = vsyncadd [#allocation9 + $0x1], 4294967040 }
   0xe   :  { %2257 = dma.done.wait [#allocation9 + $0x2], 256 }
   0xf   :  { %2258 = vsyncadd [#allocation9 + $0x2], 4294967040 }
  0x10   :  { %2259 = dma.done.wait [#allocation9 + $0x3], 256 }
  0x11   :  { %2260 = vsyncadd [#allocation9 + $0x3], 4294967040  ;;  %v2261_v8 = vmov 0.0   ;;  %vm2262_vm0 = vmmov 0   ;;  %v2117_v9 = vld [vmem:[#allocation2 + $0x8] sm:$0xff]   ;;  %v2353_v10 = vld [vmem:[#allocation3 + $0x8] sm:$0xff]  }
  0x12   :  { %1972 = vmatprep.subr.bf16.mxu1 %v2261_v8  ;;  %1976 = vmatprep.mubr.msk.bf16.mxu1 %vm2262_vm0, %v2261_v8  ;;  %v2119_v11 = vld [vmem:[#allocation2] sm:$0xff]   ;;  %v2356_v12 = vld [vmem:[#allocation3] sm:$0xff]   ;;  %vm227_vm1 = vcmask 261120   ;;  %v253_v14 = vld [vmem:[%s2793_s0 + $0x8] sm:$0xff]  ;;  %s2263_s24 = smov 64   ;;  %s2264_s25 = smov 32  }
  0x13   :  { %1960 = vmatprep.subr.bf16.mxu0 %v2117_v9  ;;  %1973 = vmatpush3.bf16.msra.mxu1 %v2353_v10  ;;  %v252_v13 = vld [vmem:[%s2793_s0] sm:$0xff]  ;;  %v254_v15 = vld [vmem:[%s2793_s0 + $0x10] sm:$0xff]  ;;  %v255_v17 = vld [vmem:[%s2793_s0 + $0x18] sm:$0xff]  ;;  %s2265_s14 = smov 96  }
  0x14   :  { %1961 = vmatpush3.bf16.msra.mxu0 %v2117_v9  ;;  %1974 = vmatprep.subr.bf16.mxu1 %v2261_v8  ;;  %v260_v16 = vpack.c.bf16 %v253_v14, %v252_v13  ;;  %v225_v18 = vld [vmem:[%s2794_s1] sm:$0xff]  ;;  %v261_v19 = vpack.c.bf16 %v255_v17, %v254_v15  ;;  %v257_v4 = vld [vmem:[%s2793_s0 + $0x28] sm:$0xff]  ;;  %v258_v5 = vld [vmem:[%s2793_s0 + $0x30] sm:$0xff] }
  0x15   :  { %1962 = vmatprep.subr.bf16.mxu0 %v2119_v11  ;;  %228 = vst.msk [vmem:[#allocation6] sm:$0xff] %vm227_vm1, %v225_v18  ;;  %v230_v22 = vld [vmem:[%s2795_s2] sm:$0xff]  ;;  %v259_v7 = vld [vmem:[%s2793_s0 + $0x38] sm:$0xff] }
  0x16   :  { %1964 = vmatprep.mubr.msk.bf16.mxu0 %vm227_vm1, %v260_v16  ;;  %232 = vst.msk [vmem:[#allocation7] sm:$0xff] %vm227_vm1, %v230_v22  ;;  %v2400_v24 = vld [vmem:[%s2798_s5] ss:$0 sm:$0xff]  ;;  %v263_v9 = vpack.c.bf16 %v259_v7, %v258_v5 }
  0x17   :  { %1975 = vmatpush3.bf16.msra.mxu1 %v2356_v12  ;;  %v256_v3 = vld [vmem:[%s2793_s0 + $0x20] sm:$0xff] }
  0x18   :  { %1963 = vmatpush3.bf16.msra.mxu0 %v2119_v11  ;;  %1980 = vmatprep.subr.bf16.mxu1 %v2261_v8  ;;  %v262_v6 = vpack.c.bf16 %v257_v4, %v256_v3 }
  0x19   :  { %1988 = vmatprep.subr.bf16.mxu0 %v2261_v8 }
  0x1b   :  { %1965 = vmatmul.mubr.msk.bf16.vlgmr.msra.gmra.mxu0 %vm227_vm1, %v261_v19 }
  0x1c   :  { %1989 = vmatpush3.bf16.msra.mxu0 %v2353_v10  ;;  %v360_v20 = vld [vmem:[#allocation6] sm:$0xff]  ;;  %1968 = vmatprep.mubr.msk.bf16.mxu0 %vm227_vm1, %v262_v6 }
  0x1d   :  { %1990 = vmatprep.subr.bf16.mxu0 %v2261_v8  ;;  %v362_v21 = vpack.c.bf16 %v360_v20, %v360_v20  ;;  %v361_v33 = vld [vmem:[#allocation7] sm:$0xff] }
  0x1f   :  { %1977 = vmatmul.mubr.msk.bf16.vlgmr.msra.gmra.mxu1 %vm227_vm1, %v362_v21 }
  0x20   :  { %1991 = vmatpush3.bf16.msra.mxu0 %v2356_v12  ;;  %1981 = vmatpush3.bf16.msra.mxu1 %v2353_v10 }
  0x21   :  { %2004 = vmatprep.subr.bf16.mxu0 %v2261_v8  ;;  %1984 = vmatprep.mubr.msk.bf16.mxu1 %vm2262_vm0, %v2261_v8 }
  0x22   :  { %1982 = vmatprep.subr.bf16.mxu1 %v2261_v8 }
  0x23   :  { %1969 = vmatmul.mubr.msk.bf16.gmra.mxu0 %vm227_vm1, %v263_v9 }
  0x24   :  { %1983 = vmatpush3.bf16.msra.mxu1 %v2356_v12  ;;  %1992 = vmatprep.mubr.msk.bf16.mxu0 %vm2262_vm0, %v2261_v8 }
  0x25   :  { %1996 = vmatprep.subr.bf16.mxu1 %v2261_v8 }
  0xdb   :  { %v2395_v23 = vpop.f32.mrf.mxu0 }
  0xdc   :  { %v338_v21 = vadd.f32 %v2395_v23, %v2400_v24 }
  0xdd   :  { %v329_v25 = vpop.f32.mrf.mxu0 }
  0xde   :  { %v330_v26 = vadd.f32 %v2400_v24, %v329_v25 }
  0xdf   :  { %v412_v27 = vpop.f32.mrf.mxu1  ;;  %v2419_v49 = vpop.f32.mrf.mxu0 }
  0xe0   :  { %v418_v28 = vadd.f32 %v412_v27, %v330_v26 }
  0xe1   :  { %v1978_v29 = vpop.f32.mrf.mxu1  ;;  %v332_v50 = vpop.f32.mrf.mxu0 }
  0xe2   :  { %2125 = vtanh.f32 %v418_v28  ;;  %v1847_v34 = vmul.f32 -1.442695, %v418_v28  ;;  %v333_v51 = vadd.f32 %v2400_v24, %v332_v50 }
  0xe3   :  { %v415_v30 = vpop.f32.mrf.mxu1  ;;  %v2453_v17 = vpop.f32.mrf.mxu0 }
  0xe4   :  { %2127 = vpow2.f32 %v1847_v34 }
  0xe5   :  { %v1979_v31 = vpop.f32.mrf.mxu1  ;;  %v2455_v18 = vpop.f32.mrf.mxu0 }
  0xe7   :  { %v2457_v19 = vpop.f32.mrf.mxu0 }
  0xe9   :  { %v2459_v20 = vpop.f32.mrf.mxu0 }
  0xef   :  { %v2126_v32 = vpop.eup %2125 }
  0xf0   :  { %432 = vrot.lane.b32.xlu0 %v2126_v32, %s2263_s24 }
  0xf1   :  { %v2128_v35 = vpop.eup %2127 }
  0xf2   :  { %v422_v36 = vadd.f32 1.0, %v2128_v35 }
  0xf4   :  { %427 = vrot.lane.b32.xlu0 %v361_v33, %s2264_s25  ;;  %2129 = vrcp.f32 %v422_v36 }
 0x101   :  { %v2130_v37 = vpop.eup %2129 }
 0x162   :  { %v433_v38 = vpop.permute.xlu0 %432 }
 0x163   :  { %v435_v39 = vmul.f32 %v2130_v37, %v433_v38 }
 0x165   :  { %437 = vrot.lane.b32.xlu1 %v435_v39, %s2264_s25 }
 0x166   :  { %v428_v40 = vpop.permute.xlu0 %427 }
 0x167   :  { %v430_v41 = vmul.f32 %v2130_v37, %v428_v40 }
 0x1d7   :  { %v438_v42 = vpop.permute.xlu1 %437 }
 0x1d8   :  { %v440_v43 = vadd.f32 %v438_v42, %v430_v41 }
 0x1da   :  { %2131 = vtanh.f32 %v440_v43 }
 0x1e7   :  { %v2132_v44 = vpop.eup %2131 }
 0x1e8   :  { %443 = vrot.lane.b32.xlu1 %v2132_v44, %s2263_s24 }
 0x25a   :  { %v444_v45 = vpop.permute.xlu1 %443 }
 0x25b   :  { %v2407_v46 = vmul.f32 %v2130_v37, %v444_v45 }
 0x25d   :  { %v452_v47 = vpack.c.bf16 %v2407_v46, %v2407_v46 }
 0x25f   :  { %454 = vrot.lane.b32.xlu0 %v452_v47, %s2264_s25 }
 0x2d1   :  { %v455_v48 = vpop.permute.xlu0 %454 }
 0x2d2   :  { %1985 = vmatmul.mubr.msk.bf16.vlgmr.msra.gmra.mxu1 %vm227_vm1, %v455_v48 }
 0x2d3   :  { %1997 = vmatpush3.bf16.msra.mxu1 %v2353_v10  ;;  %2000 = vmatprep.mubr.msk.bf16.mxu1 %vm2262_vm0, %v2261_v8 }
 0x2d4   :  { %1998 = vmatprep.subr.bf16.mxu1 %v2261_v8 }
 0x2d7   :  { %1999 = vmatpush3.bf16.msra.mxu1 %v2356_v12 }
 0x2d8   :  { %2012 = vmatprep.subr.bf16.mxu1 %v2261_v8 }
 0x392   :  { %v493_v52 = vpop.f32.mrf.mxu1 }
 0x393   :  { %v499_v53 = vadd.f32 %v493_v52, %v333_v51 }
 0x394   :  { %v1986_v54 = vpop.f32.mrf.mxu1 }
 0x395   :  { %2133 = vtanh.f32 %v499_v53  ;;  %v1849_v58 = vmul.f32 -1.442695, %v499_v53 }
 0x396   :  { %v496_v55 = vpop.f32.mrf.mxu1 }
 0x397   :  { %2135 = vpow2.f32 %v1849_v58 }
 0x398   :  { %v1987_v56 = vpop.f32.mrf.mxu1 }
 0x3a2   :  { %v2134_v57 = vpop.eup %2133 }
 0x3a3   :  { %509 = vrot.lane.b32.xlu1 %v2134_v57, %s2263_s24 }
 0x3a4   :  { %v2136_v59 = vpop.eup %2135 }
 0x3a5   :  { %v503_v60 = vadd.f32 1.0, %v2136_v59 }
 0x3a7   :  { %2137 = vrcp.f32 %v503_v60 }
 0x3b4   :  { %v2138_v61 = vpop.eup %2137 }
 0x3b5   :  { %v507_v0 = vmul.f32 %v2138_v61, %v440_v43  ;;  %v341_v43 = vadd.f32 %v2419_v49, %v2400_v24 }
 0x415   :  { %v510_v62 = vpop.permute.xlu1 %509 }
 0x416   :  { %v512_v63 = vmul.f32 %v2138_v61, %v510_v62 }
 0x418   :  { %514 = vrot.lane.b32.xlu0 %v512_v63, %s2264_s25 }
 0x48a   :  { %v515_v1 = vpop.permute.xlu0 %514 }
 0x48b   :  { %v517_v2 = vadd.f32 %v515_v1, %v507_v0  ;;  %v346_v1 = vadd.f32 %v2400_v24, %v2455_v18 }
 0x48d   :  { %2139 = vtanh.f32 %v517_v2 }
 0x49a   :  { %v2140_v11 = vpop.eup %2139 }
 0x49b   :  { %520 = vrot.lane.b32.xlu1 %v2140_v11, %s2263_s24 }
 0x50d   :  { %v521_v13 = vpop.permute.xlu1 %520 }
 0x50e   :  { %v2441_v14 = vmul.f32 %v2138_v61, %v521_v13 }
 0x510   :  { %v530_v15 = vpack.c.bf16 %v2441_v14, %v2441_v14 }
 0x512   :  { %532 = vrot.lane.b32.xlu0 %v530_v15, %s2264_s25 }
 0x584   :  { %v533_v16 = vpop.permute.xlu0 %532 }
 0x585   :  { %1993 = vmatmul.mubr.msk.bf16.vlgmr.msra.gmra.mxu0 %vm227_vm1, %v533_v16 }
 0x586   :  { %2005 = vmatpush3.bf16.msra.mxu0 %v2353_v10  ;;  %2008 = vmatprep.mubr.msk.bf16.mxu0 %vm2262_vm0, %v2261_v8 }
 0x587   :  { %2006 = vmatprep.subr.bf16.mxu0 %v2261_v8 }
 0x58a   :  { %2007 = vmatpush3.bf16.msra.mxu0 %v2356_v12 }
 0x58b   :  { %2020 = vmatprep.subr.bf16.mxu0 %v2261_v8 }
 0x645   :  { %v571_v22 = vpop.f32.mrf.mxu0 }
 0x646   :  { %v577_v25 = vadd.f32 %v571_v22, %v338_v21 }
 0x647   :  { %v1994_v26 = vpop.f32.mrf.mxu0 }
 0x648   :  { %2141 = vtanh.f32 %v577_v25  ;;  %v1851_v30 = vmul.f32 -1.442695, %v577_v25 }
 0x649   :  { %v574_v27 = vpop.f32.mrf.mxu0 }
 0x64a   :  { %2143 = vpow2.f32 %v1851_v30 }
 0x64b   :  { %v1995_v28 = vpop.f32.mrf.mxu0 }
 0x655   :  { %v2142_v29 = vpop.eup %2141 }
 0x656   :  { %587 = vrot.lane.b32.xlu1 %v2142_v29, %s2263_s24 }
 0x657   :  { %v2144_v31 = vpop.eup %2143 }
 0x658   :  { %v581_v32 = vadd.f32 1.0, %v2144_v31  ;;  %v349_v31 = vadd.f32 %v2400_v24, %v2459_v20 }
 0x65a   :  { %2145 = vrcp.f32 %v581_v32 }
 0x667   :  { %v2146_v33 = vpop.eup %2145 }
 0x668   :  { %v585_v23 = vmul.f32 %v2146_v33, %v517_v2 }
 0x6c8   :  { %v588_v34 = vpop.permute.xlu1 %587 }
 0x6c9   :  { %v590_v35 = vmul.f32 %v2146_v33, %v588_v34 }
 0x6cb   :  { %592 = vrot.lane.b32.xlu0 %v590_v35, %s2264_s25 }
 0x73d   :  { %v593_v36 = vpop.permute.xlu0 %592 }
 0x73e   :  { %v595_v37 = vadd.f32 %v593_v36, %v585_v23 }
 0x740   :  { %2147 = vtanh.f32 %v595_v37 }
 0x74d   :  { %v2148_v38 = vpop.eup %2147 }
 0x74e   :  { %598 = vrot.lane.b32.xlu1 %v2148_v38, %s2263_s24 }
 0x7c0   :  { %v599_v39 = vpop.permute.xlu1 %598 }
 0x7c1   :  { %v2466_v40 = vmul.f32 %v2146_v33, %v599_v39 }
 0x7c3   :  { %v608_v41 = vpack.c.bf16 %v2466_v40, %v2466_v40 }
 0x7c5   :  { %610 = vrot.lane.b32.xlu0 %v608_v41, %s2264_s25 }
 0x837   :  { %v611_v42 = vpop.permute.xlu0 %610 }
 0x838   :  { %2001 = vmatmul.mubr.msk.bf16.vlgmr.msra.gmra.mxu1 %vm227_vm1, %v611_v42 }
 0x839   :  { %2013 = vmatpush3.bf16.msra.mxu1 %v2353_v10  ;;  %2016 = vmatprep.mubr.msk.bf16.mxu1 %vm2262_vm0, %v2261_v8 }
 0x83a   :  { %2014 = vmatprep.subr.bf16.mxu1 %v2261_v8 }
 0x83d   :  { %2015 = vmatpush3.bf16.msra.mxu1 %v2356_v12 }
 0x83e   :  { %2028 = vmatprep.subr.bf16.mxu1 %v2261_v8 }
 0x8f8   :  { %v649_v44 = vpop.f32.mrf.mxu1 }
 0x8f9   :  { %v655_v45 = vadd.f32 %v649_v44, %v341_v43 }
 0x8fa   :  { %v2002_v47 = vpop.f32.mrf.mxu1 }
 0x8fb   :  { %2149 = vtanh.f32 %v655_v45  ;;  %v1853_v52 = vmul.f32 -1.442695, %v655_v45 }
 0x8fc   :  { %v652_v48 = vpop.f32.mrf.mxu1 }
 0x8fd   :  { %2151 = vpow2.f32 %v1853_v52 }
 0x8fe   :  { %v2003_v50 = vpop.f32.mrf.mxu1 }
 0x908   :  { %v2150_v51 = vpop.eup %2149 }
 0x909   :  { %665 = vrot.lane.b32.xlu1 %v2150_v51, %s2263_s24  ;;  %v354_v51 = vadd.f32 %v2453_v17, %v2400_v24 }
 0x90a   :  { %v2152_v53 = vpop.eup %2151 }
 0x90b   :  { %v659_v54 = vadd.f32 1.0, %v2152_v53 }
 0x90d   :  { %2153 = vrcp.f32 %v659_v54 }
 0x91a   :  { %v2154_v55 = vpop.eup %2153 }
 0x91b   :  { %v663_v49 = vmul.f32 %v2154_v55, %v595_v37 }
 0x97b   :  { %v666_v56 = vpop.permute.xlu1 %665 }
 0x97c   :  { %v668_v57 = vmul.f32 %v2154_v55, %v666_v56 }
 0x97e   :  { %670 = vrot.lane.b32.xlu0 %v668_v57, %s2264_s25 }
 0x9f0   :  { %v671_v58 = vpop.permute.xlu0 %670 }
 0x9f1   :  { %v673_v59 = vadd.f32 %v671_v58, %v663_v49 }
 0x9f3   :  { %2155 = vtanh.f32 %v673_v59 }
 0xa00   :  { %v2156_v60 = vpop.eup %2155 }
 0xa01   :  { %676 = vrot.lane.b32.xlu1 %v2156_v60, %s2263_s24 }
 0xa73   :  { %v677_v61 = vpop.permute.xlu1 %676 }
 0xa74   :  { %v2483_v62 = vmul.f32 %v2154_v55, %v677_v61 }
 0xa76   :  { %v686_v63 = vpack.c.bf16 %v2483_v62, %v2483_v62 }
 0xa78   :  { %688 = vrot.lane.b32.xlu0 %v686_v63, %s2264_s25 }
 0xaea   :  { %v689_v0 = vpop.permute.xlu0 %688 }
 0xaeb   :  { %2009 = vmatmul.mubr.msk.bf16.vlgmr.msra.gmra.mxu0 %vm227_vm1, %v689_v0 }
 0xaec   :  { %2021 = vmatpush3.bf16.msra.mxu0 %v2353_v10  ;;  %2024 = vmatprep.mubr.msk.bf16.mxu0 %vm2262_vm0, %v2261_v8 }
 0xaed   :  { %2022 = vmatprep.subr.bf16.mxu0 %v2261_v8 }
 0xaf0   :  { %2023 = vmatpush3.bf16.msra.mxu0 %v2356_v12 }
 0xbab   :  { %v727_v2 = vpop.f32.mrf.mxu0 }
 0xbac   :  { %v733_v3 = vadd.f32 %v727_v2, %v346_v1 }
 0xbad   :  { %v2010_v4 = vpop.f32.mrf.mxu0 }
 0xbae   :  { %2157 = vtanh.f32 %v733_v3  ;;  %v1855_v9 = vmul.f32 -1.442695, %v733_v3  ;;  %v2121_v4 = vld [vmem:[#allocation4 + $0x8] sm:$0xff]  }
 0xbaf   :  { %v730_v5 = vpop.f32.mrf.mxu0  ;;  %2036 = vmatprep.subr.bf16.mxu0 %v2121_v4 }
 0xbb0   :  { %2159 = vpow2.f32 %v1855_v9  ;;  %v2122_v5 = vld [vmem:[#allocation4] sm:$0xff]  }
 0xbb1   :  { %v2011_v6 = vpop.f32.mrf.mxu0 }
 0xbbb   :  { %v2158_v7 = vpop.eup %2157 }
 0xbbc   :  { %743 = vrot.lane.b32.xlu1 %v2158_v7, %s2263_s24 }
 0xbbd   :  { %v2160_v11 = vpop.eup %2159 }
 0xbbe   :  { %v737_v13 = vadd.f32 1.0, %v2160_v11 }
 0xbc0   :  { %2161 = vrcp.f32 %v737_v13 }
 0xbcd   :  { %v2162_v15 = vpop.eup %2161 }
 0xbce   :  { %v741_v18 = vmul.f32 %v2162_v15, %v673_v59 }
 0xc2e   :  { %v744_v16 = vpop.permute.xlu1 %743 }
 0xc2f   :  { %v746_v21 = vmul.f32 %v2162_v15, %v744_v16 }
 0xc31   :  { %748 = vrot.lane.b32.xlu0 %v746_v21, %s2264_s25 }
 0xca3   :  { %v749_v22 = vpop.permute.xlu0 %748 }
 0xca4   :  { %v751_v25 = vadd.f32 %v749_v22, %v741_v18  ;;  %v2553_v22 = vld [vmem:[#allocation5 + $0x8] sm:$0xff]  }
 0xca6   :  { %2163 = vtanh.f32 %v751_v25 }
 0xcb3   :  { %v2164_v26 = vpop.eup %2163 }
 0xcb4   :  { %754 = vrot.lane.b32.xlu1 %v2164_v26, %s2263_s24  ;;  %v231_v26 = vld [vmem:[%s2795_s2 + $0x8] sm:$0xff] }
 0xcb5   :  { %233 = vst.msk [vmem:[#allocation7 + $0x8] sm:$0xff] %vm227_vm1, %v231_v26 }
 0xd26   :  { %v755_v27 = vpop.permute.xlu1 %754 }
 0xd27   :  { %v2499_v28 = vmul.f32 %v2162_v15, %v755_v27  ;;  %v1108_v27 = vld [vmem:[#allocation7 + $0x8] sm:$0xff] }
 0xd29   :  { %v764_v29 = vpack.c.bf16 %v2499_v28, %v2499_v28 }
 0xd2b   :  { %766 = vrot.lane.b32.xlu0 %v764_v29, %s2264_s25 }
 0xd9d   :  { %v767_v30 = vpop.permute.xlu0 %766 }
 0xd9e   :  { %2017 = vmatmul.mubr.msk.bf16.vlgmr.msra.gmra.mxu1 %vm227_vm1, %v767_v30 }
 0xd9f   :  { %2029 = vmatpush3.bf16.msra.mxu1 %v2353_v10  ;;  %2032 = vmatprep.mubr.msk.bf16.mxu1 %vm2262_vm0, %v2261_v8 }
 0xda0   :  { %2030 = vmatprep.subr.bf16.mxu1 %v2261_v8 }
 0xda3   :  { %2031 = vmatpush3.bf16.msra.mxu1 %v2356_v12 }
 0xda4   :  { %2048 = vmatprep.subr.bf16.mxu1 %v2261_v8 }
 0xe5e   :  { %v805_v32 = vpop.f32.mrf.mxu1 }
 0xe5f   :  { %v811_v33 = vadd.f32 %v805_v32, %v349_v31  ;;  %v357_v32 = vadd.f32 %v2457_v19, %v2400_v24 }
 0xe60   :  { %v2018_v34 = vpop.f32.mrf.mxu1 }
 0xe61   :  { %2165 = vtanh.f32 %v811_v33  ;;  %v1857_v10 = vmul.f32 -1.442695, %v811_v33 }
 0xe62   :  { %v808_v35 = vpop.f32.mrf.mxu1 }
 0xe63   :  { %2167 = vpow2.f32 %v1857_v10 }
 0xe64   :  { %v2019_v23 = vpop.f32.mrf.mxu1 }
 0xe6e   :  { %v2166_v36 = vpop.eup %2165 }
 0xe6f   :  { %821 = vrot.lane.b32.xlu1 %v2166_v36, %s2263_s24 }
 0xe70   :  { %v2168_v37 = vpop.eup %2167 }
 0xe71   :  { %v815_v38 = vadd.f32 1.0, %v2168_v37  ;;  %v2588_v37 = vld [vmem:[%s2801_s8] ss:$0 sm:$0xff] }
 0xe73   :  { %2169 = vrcp.f32 %v815_v38 }
 0xe80   :  { %v2170_v12 = vpop.eup %2169 }
 0xe81   :  { %v819_v20 = vmul.f32 %v2170_v12, %v751_v25  ;;  %v2558_v25 = vld [vmem:[#allocation5] sm:$0xff]  }
 0xee1   :  { %v822_v39 = vpop.permute.xlu1 %821 }
 0xee2   :  { %v824_v41 = vmul.f32 %v2170_v12, %v822_v39 }
 0xee4   :  { %826 = vrot.lane.b32.xlu0 %v824_v41, %s2264_s25 }
 0xf56   :  { %v827_v42 = vpop.permute.xlu0 %826 }
 0xf57   :  { %v829_v43 = vadd.f32 %v827_v42, %v819_v20 }
 0xf59   :  { %2171 = vtanh.f32 %v829_v43 }
 0xf66   :  { %v2172_v44 = vpop.eup %2171 }
 0xf67   :  { %832 = vrot.lane.b32.xlu1 %v2172_v44, %s2263_s24 }
 0xfd9   :  { %v833_v45 = vpop.permute.xlu1 %832 }
 0xfda   :  { %v2516_v47 = vmul.f32 %v2170_v12, %v833_v45 }
 0xfdc   :  { %v842_v48 = vpack.c.bf16 %v2516_v47, %v2516_v47 }
 0xfde   :  { %844 = vrot.lane.b32.xlu0 %v842_v48, %s2264_s25 }
0x1050   :  { %v845_v50 = vpop.permute.xlu0 %844 }
0x1051   :  { %2025 = vmatmul.mubr.msk.bf16.vlgmr.msra.gmra.mxu0 %vm227_vm1, %v845_v50 }
0x1052   :  { %2037 = vmatpush3.bf16.msra.mxu0 %v2121_v4 }
0x1053   :  { %2038 = vmatprep.subr.bf16.mxu0 %v2122_v5 }
0x1056   :  { %2039 = vmatpush3.bf16.msra.mxu0 %v2122_v5 }
0x1057   :  { %2064 = vmatprep.subr.bf16.mxu0 %v2261_v8 }
0x1111   :  { %v883_v52 = vpop.f32.mrf.mxu0 }
0x1112   :  { %v889_v53 = vadd.f32 %v883_v52, %v354_v51 }
0x1113   :  { %v2026_v54 = vpop.f32.mrf.mxu0 }
0x1114   :  { %2173 = vtanh.f32 %v889_v53  ;;  %v1859_v49 = vmul.f32 -1.442695, %v889_v53 }
0x1115   :  { %v886_v55 = vpop.f32.mrf.mxu0 }
0x1116   :  { %2175 = vpow2.f32 %v1859_v49 }
0x1117   :  { %v2027_v56 = vpop.f32.mrf.mxu0 }
0x1121   :  { %v2174_v57 = vpop.eup %2173 }
0x1122   :  { %899 = vrot.lane.b32.xlu1 %v2174_v57, %s2263_s24 }
0x1123   :  { %v2176_v58 = vpop.eup %2175 }
0x1124   :  { %v893_v59 = vadd.f32 1.0, %v2176_v58 }
0x1126   :  { %2177 = vrcp.f32 %v893_v59 }
0x1133   :  { %v2178_v60 = vpop.eup %2177 }
0x1134   :  { %v897_v17 = vmul.f32 %v2178_v60, %v829_v43 }
0x1194   :  { %v900_v61 = vpop.permute.xlu1 %899 }
0x1195   :  { %v902_v63 = vmul.f32 %v2178_v60, %v900_v61 }
0x1197   :  { %904 = vrot.lane.b32.xlu0 %v902_v63, %s2264_s25 }
0x119b   :  { %448 = vrot.lane.b32.xlu0 %v2407_v46, %s2264_s25 }
0x119f   :  { %603 = vrot.lane.b32.xlu0 %v2466_v40, %s2264_s25  ;;  %v226_v40 = vld [vmem:[%s2794_s1 + $0x8] sm:$0xff] }
0x11a0   :  { %229 = vst.msk [vmem:[#allocation6 + $0x8] sm:$0xff] %vm227_vm1, %v226_v40 }
0x11a7   :  { %v1106_v30 = vld [vmem:[#allocation6 + $0x8] sm:$0xff] }
0x11a8   :  { %v1109_v31 = vpack.c.bf16 %v1106_v30, %v1106_v30 }
0x1209   :  { %v905_v0 = vpop.permute.xlu0 %904 }
0x120a   :  { %v2530_v1 = vadd.f32 %v905_v0, %v897_v17 }
0x120c   :  { %2179 = vtanh.f32 %v2530_v1 }
0x120d   :  { %v449_v2 = vpop.permute.xlu0 %448 }
0x120e   :  { %451 = vst.msk [vmem:[#allocation8] sm:$0xff] %vm227_vm1, %v449_v2 }
0x1211   :  { %v604_v3 = vpop.permute.xlu0 %603 }
0x1212   :  { %607 = vst.msk [vmem:[#allocation8 + $0x10] sm:$0xff] %vm227_vm1, %v604_v3 }
0x1219   :  { %v2180_v46 = vpop.eup %2179  ;;  %v1000_v16 = vld [vmem:[#allocation8 + $0x10] sm:$0xff] }
0x121a   :  { %910 = vrot.lane.b32.xlu1 %v2180_v46, %s2263_s24 }
0x121e   :  { %525 = vrot.lane.b32.xlu1 %v2441_v14, %s2264_s25 }
0x1222   :  { %681 = vrot.lane.b32.xlu1 %v2483_v62, %s2264_s25  ;;  %v998_v62 = vld [vmem:[#allocation8] sm:$0xff] }
0x128c   :  { %v911_v6 = vpop.permute.xlu1 %910 }
0x128d   :  { %v2545_v7 = vmul.f32 %v2178_v60, %v911_v6 }
0x128f   :  { %v920_v9 = vpack.c.bf16 %v2545_v7, %v2545_v7 }
0x1290   :  { %v526_v11 = vpop.permute.xlu1 %525 }
0x1291   :  { %529 = vst.msk [vmem:[#allocation8 + $0x8] sm:$0xff] %vm227_vm1, %v526_v11  ;;  %922 = vrot.lane.b32.xlu0 %v920_v9, %s2264_s25 }
0x1294   :  { %v682_v14 = vpop.permute.xlu1 %681 }
0x1295   :  { %685 = vst.msk [vmem:[#allocation8 + $0x18] sm:$0xff] %vm227_vm1, %v682_v14  ;;  %1174 = vrot.lane.b32.xlu0 %v1108_v27, %s2264_s25 }
0x1298   :  { %v999_v13 = vld [vmem:[#allocation8 + $0x8] sm:$0xff] }
0x1299   :  { %v1006_v15 = vpack.c.bf16 %v999_v13, %v998_v62 }
0x129b   :  { %2040 = vmatprep.mubr.msk.bf16.mxu0 %vm227_vm1, %v1006_v15 }
0x129c   :  { %v1001_v21 = vld [vmem:[#allocation8 + $0x18] sm:$0xff] }
0x129d   :  { %v1007_v18 = vpack.c.bf16 %v1001_v21, %v1000_v16 }
0x129f   :  { %2041 = vmatmul.mubr.msk.bf16.vlgmr.msra.gmra.mxu0 %vm227_vm1, %v1007_v18 }
0x12a0   :  { %2065 = vmatpush3.bf16.msra.mxu0 %v2553_v22 }
0x12a1   :  { %2066 = vmatprep.subr.bf16.mxu0 %v2261_v8 }
0x12a4   :  { %2067 = vmatpush3.bf16.msra.mxu0 %v2558_v25 }
0x12a5   :  { %2080 = vmatprep.subr.bf16.mxu0 %v2261_v8 }
0x1303   :  { %v923_v29 = vpop.permute.xlu0 %922 }
0x1304   :  { %2033 = vmatmul.mubr.msk.bf16.vlgmr.msra.gmra.mxu1 %vm227_vm1, %v923_v29 }
0x1305   :  { %2049 = vmatpush3.bf16.msra.mxu1 %v2553_v22  ;;  %2052 = vmatprep.mubr.msk.bf16.mxu1 %vm2262_vm0, %v2261_v8 }
0x1306   :  { %2050 = vmatprep.subr.bf16.mxu1 %v2261_v8 }
0x1307   :  { %v1175_v52 = vpop.permute.xlu0 %1174 }
0x1309   :  { %2051 = vmatpush3.bf16.msra.mxu1 %v2558_v25 }
0x130a   :  { %2056 = vmatprep.subr.bf16.mxu1 %v2261_v8 }
0x130c   :  { %2053 = vmatmul.mubr.msk.bf16.vlgmr.msra.gmra.mxu1 %vm227_vm1, %v1109_v31 }
0x130d   :  { %2057 = vmatpush3.bf16.msra.mxu1 %v2553_v22  ;;  %2060 = vmatprep.mubr.msk.bf16.mxu1 %vm2262_vm0, %v2261_v8 }
0x130e   :  { %2058 = vmatprep.subr.bf16.mxu1 %v2261_v8 }
0x1311   :  { %2059 = vmatpush3.bf16.msra.mxu1 %v2558_v25 }
0x1312   :  { %2072 = vmatprep.subr.bf16.mxu1 %v2261_v8 }
0x135f   :  { %v2583_v33 = vpop.f32.mrf.mxu0 }
0x1361   :  { %v1074_v36 = vpop.f32.mrf.mxu0 }
0x1362   :  { %v1075_v12 = vadd.f32 %v2588_v37, %v1074_v36 }
0x1363   :  { %v2619_v11 = vpop.f32.mrf.mxu0 }
0x1365   :  { %v1077_v14 = vpop.f32.mrf.mxu0 }
0x1366   :  { %v1078_v62 = vadd.f32 %v2588_v37, %v1077_v14 }
0x13c4   :  { %v961_v34 = vpop.f32.mrf.mxu1 }
0x13c5   :  { %v967_v35 = vadd.f32 %v961_v34, %v357_v32 }
0x13c6   :  { %v2034_v23 = vpop.f32.mrf.mxu1 }
0x13c7   :  { %v1861_v49 = vmul.f32 -1.442695, %v967_v35 }
0x13c8   :  { %v964_v10 = vpop.f32.mrf.mxu1 }
0x13ca   :  { %v2035_v38 = vpop.f32.mrf.mxu1 }
0x13cc   :  { %v1159_v39 = vpop.f32.mrf.mxu1 }
0x13cd   :  { %v1165_v41 = vadd.f32 %v1159_v39, %v1075_v12 }
0x13ce   :  { %v2054_v20 = vpop.f32.mrf.mxu1 }
0x13cf   :  { %2181 = vtanh.f32 %v1165_v41  ;;  %v1872_v43 = vmul.f32 -1.442695, %v1165_v41 }
0x13d0   :  { %v1162_v24 = vpop.f32.mrf.mxu1 }
0x13d1   :  { %2183 = vpow2.f32 %v1872_v43 }
0x13d2   :  { %v2055_v19 = vpop.f32.mrf.mxu1 }
0x13dc   :  { %v2182_v42 = vpop.eup %2181 }
0x13dd   :  { %1179 = vrot.lane.b32.xlu1 %v2182_v42, %s2263_s24 }
0x13de   :  { %v2184_v44 = vpop.eup %2183 }
0x13df   :  { %v1169_v45 = vadd.f32 1.0, %v2184_v44 }
0x13e1   :  { %2185 = vrcp.f32 %v1169_v45 }
0x13ee   :  { %v2186_v48 = vpop.eup %2185 }
0x13ef   :  { %v1177_v53 = vmul.f32 %v2186_v48, %v1175_v52  ;;  %v1083_v52 = vadd.f32 %v2583_v33, %v2588_v37 }
0x144f   :  { %v1180_v50 = vpop.permute.xlu1 %1179 }
0x1450   :  { %v1182_v51 = vmul.f32 %v2186_v48, %v1180_v50 }
0x1452   :  { %1184 = vrot.lane.b32.xlu1 %v1182_v51, %s2264_s25 }
0x14c4   :  { %v1185_v54 = vpop.permute.xlu1 %1184 }
0x14c5   :  { %v1187_v55 = vadd.f32 %v1185_v54, %v1177_v53 }
0x14c7   :  { %2187 = vtanh.f32 %v1187_v55 }
0x14c8   :  { %2189 = vtanh.f32 %v967_v35 }
0x14c9   :  { %2191 = vpow2.f32 %v1861_v49 }
0x14d4   :  { %v2188_v56 = vpop.eup %2187 }
0x14d5   :  { %1190 = vrot.lane.b32.xlu0 %v2188_v56, %s2263_s24  ;;  %v2190_v57 = vpop.eup %2189 }
0x14d6   :  { %v2192_v58 = vpop.eup %2191 }
0x14d7   :  { %v971_v59 = vadd.f32 1.0, %v2192_v58 }
0x14d9   :  { %977 = vrot.lane.b32.xlu0 %v2190_v57, %s2263_s24  ;;  %2193 = vrcp.f32 %v971_v59 }
0x14e6   :  { %v2194_v17 = vpop.eup %2193 }
0x14e7   :  { %v975_v4 = vmul.f32 %v2194_v17, %v2530_v1 }
0x1547   :  { %v1191_v60 = vpop.permute.xlu0 %1190 }
0x1548   :  { %v2595_v61 = vmul.f32 %v2186_v48, %v1191_v60 }
0x154a   :  { %v1199_v63 = vpack.c.bf16 %v2595_v61, %v2595_v61 }
0x154b   :  { %v978_v0 = vpop.permute.xlu0 %977 }
0x154c   :  { %v980_v2 = vmul.f32 %v2194_v17, %v978_v0  ;;  %1201 = vrot.lane.b32.xlu1 %v1199_v63, %s2264_s25 }
0x154e   :  { %982 = vrot.lane.b32.xlu0 %v980_v2, %s2264_s25 }
0x15be   :  { %v1202_v3 = vpop.permute.xlu1 %1201 }
0x15bf   :  { %2061 = vmatmul.mubr.msk.bf16.vlgmr.msra.gmra.mxu1 %vm227_vm1, %v1202_v3 }
0x15c0   :  { %v983_v5 = vpop.permute.xlu0 %982  ;;  %2073 = vmatpush3.bf16.msra.mxu1 %v2553_v22  ;;  %2076 = vmatprep.mubr.msk.bf16.mxu1 %vm2262_vm0, %v2261_v8 }
0x15c1   :  { %v2606_v46 = vadd.f32 %v983_v5, %v975_v4  ;;  %2074 = vmatprep.subr.bf16.mxu1 %v2261_v8 }
0x15c3   :  { %2195 = vtanh.f32 %v2606_v46 }
0x15c4   :  { %2075 = vmatpush3.bf16.msra.mxu1 %v2558_v25 }
0x15c5   :  { %2088 = vmatprep.subr.bf16.mxu1 %v2261_v8 }
0x15d0   :  { %v2196_v40 = vpop.eup %2195 }
0x15d1   :  { %988 = vrot.lane.b32.xlu0 %v2196_v40, %s2263_s24 }
0x15d5   :  { %759 = vrot.lane.b32.xlu0 %v2499_v28, %s2264_s25 }
0x15d9   :  { %915 = vrot.lane.b32.xlu0 %v2545_v7, %s2264_s25 }
0x1643   :  { %v989_v1 = vpop.permute.xlu0 %988 }
0x1644   :  { %v991_v36 = vmul.f32 %v2194_v17, %v989_v1 }
0x1647   :  { %v760_v6 = vpop.permute.xlu0 %759 }
0x1648   :  { %763 = vst.msk [vmem:[#allocation8 + $0x20] sm:$0xff] %vm227_vm1, %v760_v6 }
0x164b   :  { %v916_v9 = vpop.permute.xlu0 %915 }
0x164c   :  { %919 = vst.msk [vmem:[#allocation8 + $0x30] sm:$0xff] %vm227_vm1, %v916_v9  ;;  %v1086_v9 = vadd.f32 %v2619_v11, %v2588_v37 }
0x1653   :  { %v1004_v19 = vld [vmem:[#allocation8 + $0x30] sm:$0xff] }
0x167f   :  { %v1240_v13 = vpop.f32.mrf.mxu1 }
0x1680   :  { %v1246_v15 = vadd.f32 %v1240_v13, %v1078_v62 }
0x1681   :  { %v2062_v16 = vpop.f32.mrf.mxu1 }
0x1682   :  { %2197 = vtanh.f32 %v1246_v15  ;;  %v1874_v7 = vmul.f32 -1.442695, %v1246_v15 }
0x1683   :  { %v1243_v28 = vpop.f32.mrf.mxu1 }
0x1684   :  { %2199 = vpow2.f32 %v1874_v7 }
0x1685   :  { %v2063_v21 = vpop.f32.mrf.mxu1 }
0x168f   :  { %v2198_v18 = vpop.eup %2197 }
0x1690   :  { %1256 = vrot.lane.b32.xlu1 %v2198_v18, %s2263_s24 }
0x1691   :  { %v2200_v26 = vpop.eup %2199 }
0x1692   :  { %v1250_v27 = vadd.f32 1.0, %v2200_v26 }
0x1694   :  { %2201 = vrcp.f32 %v1250_v27 }
0x16a1   :  { %v2202_v29 = vpop.eup %2201 }
0x16a2   :  { %v1254_v32 = vmul.f32 %v2202_v29, %v1187_v55 }
0x1702   :  { %v1257_v30 = vpop.permute.xlu1 %1256 }
0x1703   :  { %v1259_v31 = vmul.f32 %v2202_v29, %v1257_v30 }
0x1705   :  { %1261 = vrot.lane.b32.xlu1 %v1259_v31, %s2264_s25 }
0x1777   :  { %v1262_v34 = vpop.permute.xlu1 %1261 }
0x1778   :  { %v1264_v35 = vadd.f32 %v1262_v34, %v1254_v32 }
0x177a   :  { %2203 = vtanh.f32 %v1264_v35 }
0x1787   :  { %v2204_v23 = vpop.eup %2203 }
0x1788   :  { %1267 = vrot.lane.b32.xlu1 %v2204_v23, %s2263_s24 }
0x178c   :  { %837 = vrot.lane.b32.xlu1 %v2516_v47, %s2264_s25  ;;  %v1002_v47 = vld [vmem:[#allocation8 + $0x20] sm:$0xff] }
0x1790   :  { %993 = vrot.lane.b32.xlu1 %v991_v36, %s2264_s25 }
0x17fa   :  { %v1268_v10 = vpop.permute.xlu1 %1267 }
0x17fb   :  { %v2628_v38 = vmul.f32 %v2202_v29, %v1268_v10 }
0x17fd   :  { %v1277_v12 = vpack.c.bf16 %v2628_v38, %v2628_v38 }
0x17fe   :  { %v838_v39 = vpop.permute.xlu1 %837 }
0x17ff   :  { %841 = vst.msk [vmem:[#allocation8 + $0x28] sm:$0xff] %vm227_vm1, %v838_v39  ;;  %1279 = vrot.lane.b32.xlu0 %v1277_v12, %s2264_s25 }
0x1802   :  { %v994_v41 = vpop.permute.xlu1 %993 }
0x1803   :  { %997 = vst.msk [vmem:[#allocation8 + $0x38] sm:$0xff] %vm227_vm1, %v994_v41  ;;  %1745 = vst.msk [vmem:[#allocation6] sm:$0xff] %vm227_vm1, %v994_v41 }
0x1804   :  { %1760 = vst.msk [vmem:[%s2803_s10] sm:$0xff] %vm227_vm1, %v994_v41 }
0x1806   :  { %v1003_v20 = vld [vmem:[#allocation8 + $0x28] sm:$0xff] }
0x1807   :  { %v1008_v24 = vpack.c.bf16 %v1003_v20, %v1002_v47 }
0x1809   :  { %2044 = vmatprep.mubr.msk.bf16.mxu0 %vm227_vm1, %v1008_v24 }
0x180a   :  { %v1005_v42 = vld [vmem:[#allocation8 + $0x38] sm:$0xff] }
0x180b   :  { %v1009_v43 = vpack.c.bf16 %v1005_v42, %v1004_v19 }
0x180d   :  { %2045 = vmatmul.mubr.msk.bf16.gmra.mxu0 %vm227_vm1, %v1009_v43 }
0x180e   :  { %2068 = vmatprep.mubr.msk.bf16.mxu0 %vm2262_vm0, %v2261_v8 }
0x1871   :  { %v1280_v44 = vpop.permute.xlu0 %1279 }
0x1872   :  { %2069 = vmatmul.mubr.msk.bf16.vlgmr.msra.gmra.mxu0 %vm227_vm1, %v1280_v44 }
0x1873   :  { %2081 = vmatpush3.bf16.msra.mxu0 %v2553_v22  ;;  %2084 = vmatprep.mubr.msk.bf16.mxu0 %vm2262_vm0, %v2261_v8 }
0x1874   :  { %2082 = vmatprep.subr.bf16.mxu0 %v2261_v8 }
0x1877   :  { %2083 = vmatpush3.bf16.msra.mxu0 %v2558_v25 }
0x1878   :  { %2096 = vmatprep.subr.bf16.mxu0 %v2261_v8 }
0x18cd   :  { %v2651_v45 = vpop.f32.mrf.mxu0 }
0x18cf   :  { %v2653_v48 = vpop.f32.mrf.mxu0 }
0x18d0   :  { %v1091_v10 = vadd.f32 %v2588_v37, %v2653_v48 }
0x18d1   :  { %v2655_v50 = vpop.f32.mrf.mxu0 }
0x18d3   :  { %v2657_v51 = vpop.f32.mrf.mxu0 }
0x1932   :  { %v1318_v53 = vpop.f32.mrf.mxu0 }
0x1933   :  { %v1324_v54 = vadd.f32 %v1318_v53, %v1083_v52 }
0x1934   :  { %v2070_v55 = vpop.f32.mrf.mxu0 }
0x1935   :  { %2205 = vtanh.f32 %v1324_v54  ;;  %v1877_v58 = vmul.f32 -1.442695, %v1324_v54 }
0x1936   :  { %v1321_v56 = vpop.f32.mrf.mxu0 }
0x1937   :  { %2207 = vpow2.f32 %v1877_v58 }
0x1938   :  { %v2071_v57 = vpop.f32.mrf.mxu0 }
0x1942   :  { %v2206_v49 = vpop.eup %2205 }
0x1943   :  { %1334 = vrot.lane.b32.xlu1 %v2206_v49, %s2263_s24 }
0x1944   :  { %v2208_v59 = vpop.eup %2207 }
0x1945   :  { %v1328_v60 = vadd.f32 1.0, %v2208_v59 }
0x1947   :  { %2209 = vrcp.f32 %v1328_v60  ;;  %v1094_v60 = vadd.f32 %v2588_v37, %v2657_v51 }
0x1954   :  { %v2210_v63 = vpop.eup %2209 }
0x1955   :  { %v1332_v33 = vmul.f32 %v2210_v63, %v1264_v35 }
0x19b5   :  { %v1335_v17 = vpop.permute.xlu1 %1334 }
0x19b6   :  { %v1337_v0 = vmul.f32 %v2210_v63, %v1335_v17 }
0x19b8   :  { %1339 = vrot.lane.b32.xlu0 %v1337_v0, %s2264_s25 }
0x1a2a   :  { %v1340_v2 = vpop.permute.xlu0 %1339 }
0x1a2b   :  { %v1342_v3 = vadd.f32 %v1340_v2, %v1332_v33 }
0x1a2d   :  { %2211 = vtanh.f32 %v1342_v3 }
0x1a3a   :  { %v2212_v4 = vpop.eup %2211 }
0x1a3b   :  { %1345 = vrot.lane.b32.xlu1 %v2212_v4, %s2263_s24 }
0x1aad   :  { %v1346_v5 = vpop.permute.xlu1 %1345 }
0x1aae   :  { %v2664_v40 = vmul.f32 %v2210_v63, %v1346_v5 }
0x1ab0   :  { %v1355_v1 = vpack.c.bf16 %v2664_v40, %v2664_v40 }
0x1ab2   :  { %1357 = vrot.lane.b32.xlu0 %v1355_v1, %s2264_s25 }
0x1b24   :  { %v1358_v6 = vpop.permute.xlu0 %1357 }
0x1b25   :  { %2077 = vmatmul.mubr.msk.bf16.vlgmr.msra.gmra.mxu1 %vm227_vm1, %v1358_v6 }
0x1b26   :  { %2089 = vmatpush3.bf16.msra.mxu1 %v2553_v22  ;;  %2092 = vmatprep.mubr.msk.bf16.mxu1 %vm2262_vm0, %v2261_v8 }
0x1b27   :  { %2090 = vmatprep.subr.bf16.mxu1 %v2261_v8 }
0x1b2a   :  { %2091 = vmatpush3.bf16.msra.mxu1 %v2558_v25 }
0x1b2b   :  { %2104 = vmatprep.subr.bf16.mxu1 %v2261_v8 }
0x1be5   :  { %v1396_v14 = vpop.f32.mrf.mxu1 }
0x1be6   :  { %v1402_v62 = vadd.f32 %v1396_v14, %v1086_v9 }
0x1be7   :  { %v2078_v13 = vpop.f32.mrf.mxu1 }
0x1be8   :  { %2213 = vtanh.f32 %v1402_v62  ;;  %v1880_v21 = vmul.f32 -1.442695, %v1402_v62 }
0x1be9   :  { %v1399_v15 = vpop.f32.mrf.mxu1 }
0x1bea   :  { %2215 = vpow2.f32 %v1880_v21 }
0x1beb   :  { %v2079_v16 = vpop.f32.mrf.mxu1 }
0x1bf5   :  { %v2214_v28 = vpop.eup %2213 }
0x1bf6   :  { %1412 = vrot.lane.b32.xlu1 %v2214_v28, %s2263_s24  ;;  %v1099_v28 = vadd.f32 %v2651_v45, %v2588_v37 }
0x1bf7   :  { %v2216_v18 = vpop.eup %2215 }
0x1bf8   :  { %v1406_v7 = vadd.f32 1.0, %v2216_v18 }
0x1bfa   :  { %2217 = vrcp.f32 %v1406_v7 }
0x1c07   :  { %v2218_v26 = vpop.eup %2217 }
0x1c08   :  { %v1410_v11 = vmul.f32 %v2218_v26, %v1342_v3 }
0x1c68   :  { %v1413_v27 = vpop.permute.xlu1 %1412 }
0x1c69   :  { %v1415_v29 = vmul.f32 %v2218_v26, %v1413_v27 }
0x1c6b   :  { %1417 = vrot.lane.b32.xlu0 %v1415_v29, %s2264_s25 }
0x1cdd   :  { %v1418_v30 = vpop.permute.xlu0 %1417 }
0x1cde   :  { %v1420_v31 = vadd.f32 %v1418_v30, %v1410_v11 }
0x1ce0   :  { %2219 = vtanh.f32 %v1420_v31 }
0x1ced   :  { %v2220_v32 = vpop.eup %2219 }
0x1cee   :  { %1423 = vrot.lane.b32.xlu1 %v2220_v32, %s2263_s24 }
0x1d60   :  { %v1424_v34 = vpop.permute.xlu1 %1423 }
0x1d61   :  { %v2681_v35 = vmul.f32 %v2218_v26, %v1424_v34 }
0x1d63   :  { %v1433_v23 = vpack.c.bf16 %v2681_v35, %v2681_v35 }
0x1d65   :  { %1435 = vrot.lane.b32.xlu0 %v1433_v23, %s2264_s25 }
0x1dd7   :  { %v1436_v36 = vpop.permute.xlu0 %1435 }
0x1dd8   :  { %2085 = vmatmul.mubr.msk.bf16.vlgmr.msra.gmra.mxu0 %vm227_vm1, %v1436_v36 }
0x1dd9   :  { %2097 = vmatpush3.bf16.msra.mxu0 %v2553_v22  ;;  %2100 = vmatprep.mubr.msk.bf16.mxu0 %vm2262_vm0, %v2261_v8 }
0x1dda   :  { %2098 = vmatprep.subr.bf16.mxu0 %v2261_v8 }
0x1ddd   :  { %2099 = vmatpush3.bf16.msra.mxu0 %v2558_v25 }
0x1e98   :  { %v1474_v12 = vpop.f32.mrf.mxu0 }
0x1e99   :  { %v1480_v39 = vadd.f32 %v1474_v12, %v1091_v10 }
0x1e9a   :  { %v2086_v41 = vpop.f32.mrf.mxu0 }
0x1e9b   :  { %2221 = vtanh.f32 %v1480_v39  ;;  %v1883_v19 = vmul.f32 -1.442695, %v1480_v39 }
0x1e9c   :  { %v1477_v47 = vpop.f32.mrf.mxu0 }
0x1e9d   :  { %2223 = vpow2.f32 %v1883_v19 }
0x1e9e   :  { %v2087_v20 = vpop.f32.mrf.mxu0 }
0x1ea8   :  { %v2222_v24 = vpop.eup %2221 }
0x1ea9   :  { %1490 = vrot.lane.b32.xlu1 %v2222_v24, %s2263_s24  ;;  %v1102_v24 = vadd.f32 %v2655_v50, %v2588_v37 }
0x1eaa   :  { %v2224_v42 = vpop.eup %2223 }
0x1eab   :  { %v1484_v43 = vadd.f32 1.0, %v2224_v42 }
0x1ead   :  { %2225 = vrcp.f32 %v1484_v43 }
0x1eba   :  { %v2226_v44 = vpop.eup %2225 }
0x1ebb   :  { %v1488_v48 = vmul.f32 %v2226_v44, %v1420_v31 }
0x1f1b   :  { %v1491_v52 = vpop.permute.xlu1 %1490 }
0x1f1c   :  { %v1493_v53 = vmul.f32 %v2226_v44, %v1491_v52 }
0x1f1e   :  { %1495 = vrot.lane.b32.xlu0 %v1493_v53, %s2264_s25 }
0x1f90   :  { %v1496_v54 = vpop.permute.xlu0 %1495 }
0x1f91   :  { %v1498_v55 = vadd.f32 %v1496_v54, %v1488_v48 }
0x1f93   :  { %2227 = vtanh.f32 %v1498_v55 }
0x1fa0   :  { %v2228_v56 = vpop.eup %2227 }
0x1fa1   :  { %1501 = vrot.lane.b32.xlu1 %v2228_v56, %s2263_s24 }
0x2013   :  { %v1502_v57 = vpop.permute.xlu1 %1501 }
0x2014   :  { %v2697_v49 = vmul.f32 %v2226_v44, %v1502_v57 }
0x2016   :  { %v1511_v58 = vpack.c.bf16 %v2697_v49, %v2697_v49 }
0x2018   :  { %1513 = vrot.lane.b32.xlu0 %v1511_v58, %s2264_s25 }
0x208a   :  { %v1514_v59 = vpop.permute.xlu0 %1513 }
0x208b   :  { %2093 = vmatmul.mubr.msk.bf16.vlgmr.msra.gmra.mxu1 %vm227_vm1, %v1514_v59 }
0x208c   :  { %2105 = vmatpush3.bf16.msra.mxu1 %v2553_v22  ;;  %2108 = vmatprep.mubr.msk.bf16.mxu1 %vm2262_vm0, %v2261_v8 }
0x208d   :  { %2106 = vmatprep.subr.bf16.mxu1 %v2261_v8 }
0x2090   :  { %2107 = vmatpush3.bf16.msra.mxu1 %v2558_v25 }
0x214b   :  { %v1552_v63 = vpop.f32.mrf.mxu1 }
0x214c   :  { %v1558_v17 = vadd.f32 %v1552_v63, %v1094_v60 }
0x214d   :  { %v2094_v0 = vpop.f32.mrf.mxu1 }
0x214e   :  { %2229 = vtanh.f32 %v1558_v17  ;;  %v1886_v22 = vmul.f32 -1.442695, %v1558_v17 }
0x214f   :  { %v1555_v33 = vpop.f32.mrf.mxu1 }
0x2150   :  { %2231 = vpow2.f32 %v1886_v22 }
0x2151   :  { %v2095_v2 = vpop.f32.mrf.mxu1 }
0x215b   :  { %v2230_v3 = vpop.eup %2229 }
0x215c   :  { %1568 = vrot.lane.b32.xlu1 %v2230_v3, %s2263_s24 }
0x215d   :  { %v2232_v4 = vpop.eup %2231 }
0x215e   :  { %v1562_v5 = vadd.f32 1.0, %v2232_v4 }
0x2160   :  { %2233 = vrcp.f32 %v1562_v5 }
0x216d   :  { %v2234_v8 = vpop.eup %2233 }
0x216e   :  { %v1566_v51 = vmul.f32 %v2234_v8, %v1498_v55 }
0x21ce   :  { %v1569_v1 = vpop.permute.xlu1 %1568 }
0x21cf   :  { %v1571_v25 = vmul.f32 %v2234_v8, %v1569_v1 }
0x21d1   :  { %1573 = vrot.lane.b32.xlu0 %v1571_v25, %s2264_s25 }
0x2243   :  { %v1574_v6 = vpop.permute.xlu0 %1573 }
0x2244   :  { %v1576_v9 = vadd.f32 %v1574_v6, %v1566_v51 }
0x2246   :  { %2235 = vtanh.f32 %v1576_v9 }
0x2253   :  { %v2236_v14 = vpop.eup %2235 }
0x2254   :  { %1579 = vrot.lane.b32.xlu1 %v2236_v14, %s2263_s24 }
0x22c6   :  { %v1580_v62 = vpop.permute.xlu1 %1579 }
0x22c7   :  { %v2713_v13 = vmul.f32 %v2234_v8, %v1580_v62 }
0x22c9   :  { %v1589_v15 = vpack.c.bf16 %v2713_v13, %v2713_v13 }
0x22cb   :  { %1591 = vrot.lane.b32.xlu0 %v1589_v15, %s2264_s25 }
0x233d   :  { %v1592_v16 = vpop.permute.xlu0 %1591 }
0x233e   :  { %2101 = vmatmul.mubr.msk.bf16.vlgmr.msra.gmra.mxu0 %vm227_vm1, %v1592_v16 }
0x23fe   :  { %v1630_v21 = vpop.f32.mrf.mxu0 }
0x23ff   :  { %v1636_v18 = vadd.f32 %v1630_v21, %v1099_v28 }
0x2400   :  { %v2102_v7 = vpop.f32.mrf.mxu0 }
0x2401   :  { %2237 = vtanh.f32 %v1636_v18  ;;  %v1889_v11 = vmul.f32 -1.442695, %v1636_v18 }
0x2402   :  { %v1633_v26 = vpop.f32.mrf.mxu0 }
0x2403   :  { %2239 = vpow2.f32 %v1889_v11 }
0x2404   :  { %v2103_v27 = vpop.f32.mrf.mxu0 }
0x240e   :  { %v2238_v29 = vpop.eup %2237 }
0x240f   :  { %1646 = vrot.lane.b32.xlu1 %v2238_v29, %s2263_s24 }
0x2410   :  { %v2240_v30 = vpop.eup %2239 }
0x2411   :  { %v1640_v31 = vadd.f32 1.0, %v2240_v30 }
0x2413   :  { %2241 = vrcp.f32 %v1640_v31 }
0x2420   :  { %v2242_v32 = vpop.eup %2241 }
0x2421   :  { %v1644_v45 = vmul.f32 %v2242_v32, %v1576_v9 }
0x2481   :  { %v1647_v34 = vpop.permute.xlu1 %1646 }
0x2482   :  { %v1649_v23 = vmul.f32 %v2242_v32, %v1647_v34 }
0x2484   :  { %1651 = vrot.lane.b32.xlu0 %v1649_v23, %s2264_s25 }
0x24f6   :  { %v1652_v36 = vpop.permute.xlu0 %1651 }
0x24f7   :  { %v1654_v10 = vadd.f32 %v1652_v36, %v1644_v45 }
0x24f9   :  { %2243 = vtanh.f32 %v1654_v10 }
0x2506   :  { %v2244_v12 = vpop.eup %2243 }
0x2507   :  { %1657 = vrot.lane.b32.xlu1 %v2244_v12, %s2263_s24 }
0x2579   :  { %v1658_v39 = vpop.permute.xlu1 %1657 }
0x257a   :  { %v1660_v41 = vmul.f32 %v2242_v32, %v1658_v39 }
0x257c   :  { %v1667_v47 = vpack.c.bf16 %v1660_v41, %v1660_v41 }
0x257e   :  { %1669 = vrot.lane.b32.xlu0 %v1667_v47, %s2264_s25 }
0x25f0   :  { %v1670_v20 = vpop.permute.xlu0 %1669 }
0x25f1   :  { %2109 = vmatmul.mubr.msk.bf16.vlgmr.msra.gmra.mxu1 %vm227_vm1, %v1670_v20 }
0x26b1   :  { %v1708_v19 = vpop.f32.mrf.mxu1 }
0x26b2   :  { %v1714_v42 = vadd.f32 %v1708_v19, %v1102_v24 }
0x26b3   :  { %v2110_v43 = vpop.f32.mrf.mxu1 }
0x26b4   :  { %2245 = vtanh.f32 %v1714_v42  ;;  %v1892_v48 = vmul.f32 -1.442695, %v1714_v42 }
0x26b5   :  { %v1711_v44 = vpop.f32.mrf.mxu1 }
0x26b6   :  { %2247 = vpow2.f32 %v1892_v48 }
0x26b7   :  { %v2111_v52 = vpop.f32.mrf.mxu1 }
0x26c1   :  { %v2246_v53 = vpop.eup %2245 }
0x26c2   :  { %1724 = vrot.lane.b32.xlu1 %v2246_v53, %s2263_s24 }
0x26c3   :  { %v2248_v54 = vpop.eup %2247 }
0x26c4   :  { %v1718_v55 = vadd.f32 1.0, %v2248_v54 }
0x26c6   :  { %2249 = vrcp.f32 %v1718_v55 }
0x26d3   :  { %v2250_v56 = vpop.eup %2249 }
0x26d4   :  { %v1722_v37 = vmul.f32 %v2250_v56, %v1654_v10 }
0x2734   :  { %v1725_v57 = vpop.permute.xlu1 %1724 }
0x2735   :  { %v1727_v58 = vmul.f32 %v2250_v56, %v1725_v57 }
0x2737   :  { %1729 = vrot.lane.b32.xlu0 %v1727_v58, %s2264_s25 }
0x273b   :  { %1195 = vrot.lane.b32.xlu0 %v2595_v61, %s2264_s25 }
0x273f   :  { %1350 = vrot.lane.b32.xlu0 %v2664_v40, %s2264_s25 }
0x2743   :  { %1506 = vrot.lane.b32.xlu0 %v2697_v49, %s2264_s25 }
0x2747   :  { %1662 = vrot.lane.b32.xlu0 %v1660_v41, %s2264_s25 }
0x274b   :  { %1748 = vrot.lane.b32.xlu0 %v2606_v46, %s2265_s14 }
0x27a9   :  { %v1730_v50 = vpop.permute.xlu0 %1729 }
0x27aa   :  { %v1732_v59 = vadd.f32 %v1730_v50, %v1722_v37 }
0x27ac   :  { %2251 = vtanh.f32 %v1732_v59 }
0x27ad   :  { %v1196_v60 = vpop.permute.xlu0 %1195 }
0x27ae   :  { %1198 = vst.msk [vmem:[%s2802_s9] sm:$0xff] %vm227_vm1, %v1196_v60 }
0x27b1   :  { %v1351_v61 = vpop.permute.xlu0 %1350 }
0x27b2   :  { %1878 = vst.msk [vmem:[%s2802_s9 + $0x10] sm:$0xff] %vm227_vm1, %v1351_v61 }
0x27b5   :  { %v1507_v40 = vpop.permute.xlu0 %1506 }
0x27b6   :  { %1884 = vst.msk [vmem:[%s2802_s9 + $0x20] sm:$0xff] %vm227_vm1, %v1507_v40 }
0x27b9   :  { %v2252_v46 = vpop.eup %2251  ;;  %v1663_v49 = vpop.permute.xlu0 %1662 }
0x27ba   :  { %1890 = vst.msk [vmem:[%s2802_s9 + $0x30] sm:$0xff] %vm227_vm1, %v1663_v49  ;;  %1735 = vrot.lane.b32.xlu1 %v2252_v46, %s2263_s24 }
0x27bd   :  { %v1749_v63 = vpop.permute.xlu0 %1748 }
0x27be   :  { %1751 = vst.msk [vmem:[#allocation7] sm:$0xff] %vm227_vm1, %v1749_v63  ;;  %1763 = vst.msk [vmem:[%s2804_s11] sm:$0xff] %vm227_vm1, %v1749_v63  ;;  %1272 = vrot.lane.b32.xlu1 %v2628_v38, %s2264_s25 }
0x27c2   :  { %1428 = vrot.lane.b32.xlu1 %v2681_v35, %s2264_s25 }
0x27c6   :  { %1584 = vrot.lane.b32.xlu1 %v2713_v13, %s2264_s25 }
0x282c   :  { %v1736_v17 = vpop.permute.xlu1 %1735 }
0x282d   :  { %v1738_v0 = vmul.f32 %v2250_v56, %v1736_v17 }
0x282f   :  { %1740 = vrot.lane.b32.xlu1 %v1738_v0, %s2264_s25 }
0x2830   :  { %v1273_v33 = vpop.permute.xlu1 %1272 }
0x2831   :  { %1875 = vst.msk [vmem:[%s2802_s9 + $0x8] sm:$0xff] %vm227_vm1, %v1273_v33 }
0x2833   :  { %1753 = vrot.lane.b32.xlu1 %v1732_v59, %s2265_s14 }
0x2834   :  { %v1429_v2 = vpop.permute.xlu1 %1428 }
0x2835   :  { %1881 = vst.msk [vmem:[%s2802_s9 + $0x18] sm:$0xff] %vm227_vm1, %v1429_v2 }
0x2838   :  { %v1585_v38 = vpop.permute.xlu1 %1584 }
0x2839   :  { %1887 = vst.msk [vmem:[%s2802_s9 + $0x28] sm:$0xff] %vm227_vm1, %v1585_v38 }
0x28a1   :  { %v1741_v35 = vpop.permute.xlu1 %1740 }
0x28a2   :  { %1893 = vst.msk [vmem:[%s2802_s9 + $0x38] sm:$0xff] %vm227_vm1, %v1741_v35  ;;  %1746 = vst.msk [vmem:[#allocation6 + $0x8] sm:$0xff] %vm227_vm1, %v1741_v35 }
0x28a3   :  { %1894 = vst.msk [vmem:[%s2803_s10 + $0x8] sm:$0xff] %vm227_vm1, %v1741_v35 }
0x28a5   :  { %v1754_v3 = vpop.permute.xlu1 %1753 }
0x28a6   :  { %1756 = vst.msk [vmem:[#allocation7 + $0x8] sm:$0xff] %vm227_vm1, %v1754_v3  ;;  %1895 = vst.msk [vmem:[%s2804_s11 + $0x8] sm:$0xff] %vm227_vm1, %v1754_v3 }
0x28a7   :  { %1778 = vsyncmov [#allocation9] }
0x28aa   :  { %s1779_s7 = vpop.sfrf %1778 }
0x28ab   :  { %p1896_p0 = scmp.ne.s32.totalorder %s1779_s7, 0 }
0x28ad   :  { %1783 = shalt.err (%p1896_p0)  }
0x28ae   :  { %1785 = vsyncmov [#allocation9 + $0x1] }
0x28b1   :  { %s1786_s9 = vpop.sfrf %1785 }
0x28b2   :  { %p1897_p1 = scmp.ne.s32.totalorder %s1786_s9, 0 }
0x28b4   :  { %1790 = shalt.err (%p1897_p1)  }
0x28b5   :  { %1792 = vsyncmov [#allocation9 + $0x2] }
0x28b8   :  { %s1793_s2 = vpop.sfrf %1792 }
0x28b9   :  { %p1898_p2 = scmp.ne.s32.totalorder %s1793_s2, 0 }
0x28bb   :  { %1797 = shalt.err (%p1898_p2)  }
0x28bc   :  { %1799 = vsyncmov [#allocation9 + $0x3] }
0x28bf   :  { %s1800_s10 = vpop.sfrf %1799 }
0x28c0   :  { %p1899_p3 = scmp.ne.s32.totalorder %s1800_s10, 0 }
0x28c2   :  { %1804 = shalt.err (%p1899_p3)  }

</bundles_post_ra>
